<compile_context>
chip_gen: v6e
topology: v6e:2x2x1
jax: 0.10.0
libtpu: 0.0.40
codegen_flags: <defaults>
</compile_context>

<pallas_src>
import functools

import jax
import jax.numpy as jnp
from jax.experimental import pallas as pl
from jax.experimental.pallas import tpu as pltpu

LEAK = 0.2       # LeakyReLU negative slope
BN_EPS = 1e-5    # nn.BatchNorm2d default eps
KSZ = 4          # conv kernel size
PAD = 1          # conv padding

VMEM_LIMIT = 48 * 1024 * 1024   # explicit scoped-VMEM budget (v5e default=16MiB)


def _round_up(x, m):
    return (x + m - 1) // m * m


def _m_tiling(M, k_p):
    """(TM, M_padded) for the GEMM row dim M = N*Ho*Wo, given full-K = k_p.

    TM is capped so the bf16 x tile stays <= ~8 MiB (double-buffer safe on
    v7x's 64 MiB VMEM) and the tiling is split 2-ways whenever M allows so the
    'parallel' M grid axis has work for both v7x TensorCores."""
    m8 = _round_up(M, 8)
    cap = max(8, ((8 << 20) // (2 * k_p)) // 8 * 8)   # rows per <=8MiB bf16 tile
    tm_max = min(512, cap)
    if m8 <= tm_max:
        if m8 >= 16:
            tm = _round_up((m8 + 1) // 2, 8)          # >=2 tiles for megacore
        else:
            tm = m8
    else:
        tm = tm_max
    return tm, _round_up(m8, tm)


# ---------------------------------------------------------------------------
# Pallas kernels (grid = (M tiles,); full K resident, no scratch accumulator)
# ---------------------------------------------------------------------------

def _gemm_bias_kernel(x_ref, w_ref, b_ref, y_ref, *, act):
    """y = x @ w + b [+ LeakyReLU].  bf16 operands, f32 MXU accumulation."""
    acc = jnp.dot(x_ref[...], w_ref[...], preferred_element_type=jnp.float32)
    acc = acc + b_ref[...]
    if act:
        acc = jnp.where(acc > 0, acc, LEAK * acc)
    y_ref[...] = acc.astype(y_ref.dtype)


def _gemm_stats_kernel(x_ref, w_ref, y_ref, stats_ref):
    """BN-layer GEMM: emits pre-BN bf16 output plus a per-M-tile f32
    [sum; sum-of-squares] block (rows 0 and 1 of an 8-row lane-dense tile),
    computed from the f32 accumulator before the bf16 store."""
    acc = jnp.dot(x_ref[...], w_ref[...], preferred_element_type=jnp.float32)
    y_ref[...] = acc.astype(y_ref.dtype)
    s = jnp.sum(acc, axis=0, keepdims=True)            # (1, Cout_p)
    ss = jnp.sum(acc * acc, axis=0, keepdims=True)     # (1, Cout_p)
    rows = jax.lax.broadcasted_iota(jnp.int32, stats_ref.shape, 0)
    s_b = jnp.broadcast_to(s, stats_ref.shape)
    ss_b = jnp.broadcast_to(ss, stats_ref.shape)
    zeros = jnp.zeros(stats_ref.shape, jnp.float32)
    stats_ref[...] = jnp.where(rows == 0, s_b, jnp.where(rows == 1, ss_b, zeros))


# ---------------------------------------------------------------------------
# Per-layer driver: im2col glue + pallas_call + (plain-JAX-fused) BN epilogue
# ---------------------------------------------------------------------------

def conv_block(x_nhwc, layer):
    """One discriminator block: Conv2d(k=4, p=1) [+BN] [+LeakyReLU].
    Takes / returns bf16 NHWC."""
    N, H, W, Cin = x_nhwc.shape
    stride = layer["stride"]
    Cout, Cout_p = layer["cout"], layer["cout_p"]
    Cin_p, K_p = layer["cin_p"], layer["k_p"]
    Ho = (H + 2 * PAD - KSZ) // stride + 1
    Wo = (W + 2 * PAD - KSZ) // stride + 1
    M = N * Ho * Wo
    TM, M_p = _m_tiling(M, K_p)
    n_m = M_p // TM

    # --- glue: spatial pad + Cin pad *before* the 16x patch blow-up ---
    xp = jnp.pad(x_nhwc.astype(jnp.bfloat16),
                 ((0, 0), (PAD, PAD), (PAD, PAD), (0, Cin_p - Cin)))
    patches = [xp[:, kh:kh + stride * Ho:stride, kw:kw + stride * Wo:stride, :]
               for kh in range(KSZ) for kw in range(KSZ)]
    cols = jnp.stack(patches, axis=3).reshape(M, K_p)     # K already padded
    if M_p > M:
        cols = jnp.pad(cols, ((0, M_p - M), (0, 0)))      # small row remainder

    cost = pl.CostEstimate(
        flops=2 * M_p * K_p * Cout_p,
        transcendentals=0,
        bytes_accessed=2 * (M_p * K_p + K_p * Cout_p + M_p * Cout_p),
    )
    gemm_params = pltpu.CompilerParams(
        dimension_semantics=("parallel",),
        vmem_limit_bytes=VMEM_LIMIT,
    )

    x_spec = pl.BlockSpec((TM, K_p), lambda m: (m, 0))
    w_spec = pl.BlockSpec((K_p, Cout_p), lambda m: (0, 0))   # resident weight
    y_spec = pl.BlockSpec((TM, Cout_p), lambda m: (m, 0))

    if layer["use_bn"]:
        # GEMM (no bias: cancelled by BN) + per-tile f32 stats.
        y, stats = pl.pallas_call(
            _gemm_stats_kernel,
            out_shape=(jax.ShapeDtypeStruct((M_p, Cout_p), jnp.bfloat16),
                       jax.ShapeDtypeStruct((8 * n_m, Cout_p), jnp.float32)),
            grid=(n_m,),
            in_specs=[x_spec, w_spec],
            out_specs=(y_spec, pl.BlockSpec((8, Cout_p), lambda m: (m, 0))),
            compiler_params=gemm_params,
            cost_estimate=cost,
        )(cols, layer["wmat"])

        # Per-channel batch stats (training-mode BatchNorm2d).  Padded rows of
        # `cols` are zero and bias-free, so they contribute 0 to sum / sumsq.
        st = stats.reshape(n_m, 8, Cout_p)[:, :2, :Cout]
        ssum = jnp.sum(st[:, 0, :], axis=0)
        ssq = jnp.sum(st[:, 1, :], axis=0)
        mean = ssum / M
        var = jnp.maximum(ssq / M - mean * mean, 0.0)
        scale = layer["gamma"][:Cout] * jax.lax.rsqrt(var + BN_EPS)
        shift = layer["beta"][:Cout] - mean * scale

        # BN apply + LeakyReLU in plain JAX (f32 math); XLA fuses this with the
        # next layer's pad / im2col producer, so no extra Pallas pass / HBM trip.
        z = y[:M, :Cout].astype(jnp.float32) * scale + shift
        z = jnp.where(z > 0, z, LEAK * z)
        return z.astype(jnp.bfloat16).reshape(N, Ho, Wo, Cout)

    y = pl.pallas_call(
        functools.partial(_gemm_bias_kernel, act=layer["use_act"]),
        out_shape=jax.ShapeDtypeStruct((M_p, Cout_p), jnp.bfloat16),
        grid=(n_m,),
        in_specs=[x_spec, w_spec,
                  pl.BlockSpec((1, Cout_p), lambda m: (0, 0))],
        out_specs=y_spec,
        compiler_params=gemm_params,
        cost_estimate=cost,
    )(cols, layer["wmat"], layer["bias"])

    return y[:M, :Cout].reshape(N, Ho, Wo, Cout)


# ---------------------------------------------------------------------------
# Parameters (pre-packed for the kernels) and full forward pass
# ---------------------------------------------------------------------------

def init_vptr_disc_params(key, input_nc, ndf=64, n_layers=3):
    """Deterministic params following the VPTRDisc layer structure
    (BatchNorm2d => bias=False on middle convs).  Conv weights are pre-reshaped
    to lane-padded bf16 GEMM matrices once at init time, with Cin padded
    per-tap to match the padded-Cin im2col layout."""

    def make_layer(k, cin, cout, stride, use_bn, use_act, use_bias):
        kw_key, b_key = jax.random.split(k)
        w = 0.02 * jax.random.normal(kw_key, (cout, cin, KSZ, KSZ), jnp.float32)
        b = (0.02 * jax.random.normal(b_key, (cout,), jnp.float32)
             if use_bias else jnp.zeros((cout,), jnp.float32))
        cin_p = _round_up(cin, 8)          # 16 * cin_p is a multiple of 128
        cout_p = _round_up(cout, 128)      # lane-dense, unmasked stores
        k_p = KSZ * KSZ * cin_p
        # torch (Cout,Cin,KH,KW) -> (KH*KW, Cin, Cout) -> pad Cin per tap
        # -> (KH*KW*Cin_p, Cout_p), matching the (tap, cin) patch order.
        wmat = jnp.transpose(w, (2, 3, 1, 0)).reshape(KSZ * KSZ, cin, cout)
        wmat = jnp.pad(wmat, ((0, 0), (0, cin_p - cin), (0, cout_p - cout)))
        wmat = wmat.reshape(k_p, cout_p).astype(jnp.bfloat16)
        bias = jnp.pad(b, (0, cout_p - cout)).reshape(1, cout_p).astype(jnp.float32)
        return dict(wmat=wmat, bias=bias,
                    gamma=jnp.ones((cout_p,), jnp.float32),    # fresh BatchNorm2d
                    beta=jnp.zeros((cout_p,), jnp.float32),
                    cin=cin, cin_p=cin_p, cout=cout, cout_p=cout_p, k_p=k_p,
                    stride=stride, use_bn=use_bn, use_act=use_act)

    keys = jax.random.split(key, n_layers + 2)
    layers = []
    # layer 0: Conv(input_nc -> ndf, s=2, bias=True) + LeakyReLU (no norm)
    layers.append(make_layer(keys[0], input_nc, ndf, 2, False, True, True))
    nf_mult = 1
    for n in range(1, n_layers):
        nf_prev, nf_mult = nf_mult, min(2 ** n, 8)
        layers.append(make_layer(keys[n], ndf * nf_prev, ndf * nf_mult, 2,
                                 True, True, False))
    nf_prev, nf_mult = nf_mult, min(2 ** n_layers, 8)
    layers.append(make_layer(keys[n_layers], ndf * nf_prev, ndf * nf_mult, 1,
                             True, True, False))
    # final: Conv(ndf*nf_mult -> 1, s=1, bias=True), no norm, no activation
    layers.append(make_layer(keys[n_layers + 1], ndf * nf_mult, 1, 1,
                             False, False, True))
    return layers


def vptr_disc_forward(x_nchw, params):
    """Forward pass.  Input (N*T, C, H, W) NCHW -> output (N*T, 1, h, w) NCHW."""
    x = jnp.transpose(x_nchw, (0, 2, 3, 1)).astype(jnp.bfloat16)  # NCHW -> NHWC
    for layer in params:
        x = conv_block(x, layer)
    return jnp.transpose(x, (0, 3, 1, 2)).astype(jnp.float32)     # NHWC -> NCHW


if __name__ == "__main__":
    key = jax.random.PRNGKey(0)
    k_param, k_input = jax.random.split(key)

    # Small synthetic configuration: input_nc=4, ndf=8, n_layers=3.
    input_nc, ndf, n_layers = 4, 8, 3
    params = init_vptr_disc_params(k_param, input_nc, ndf=ndf, n_layers=n_layers)

    # (N*T, C, H, W) = (2, 4, 32, 32) -> expected output (2, 1, 2, 2)
    x = jax.random.normal(k_input, (2, input_nc, 32, 32), jnp.float32)

    fwd = jax.jit(lambda inp: vptr_disc_forward(inp, params))
    out = jax.block_until_ready(fwd(x))
    assert out.shape == (2, 1, 2, 2), out.shape
    assert bool(jnp.all(jnp.isfinite(out))), "non-finite output"
    print("KERNEL_OK")
</pallas_src>

<mosaic_0001>
module attributes {stable_mosaic.version = 11 : i64} {
  func.func @_gemm_bias_kernel(%arg0: i32, %arg1: memref<256x128xbf16, #tpu.memory_space<vmem>>, %arg2: memref<128x128xbf16, #tpu.memory_space<vmem>>, %arg3: memref<1x128xf32, #tpu.memory_space<vmem>>, %arg4: memref<256x128xbf16, #tpu.memory_space<vmem>>) attributes {dimension_semantics = [#tpu.dimension_semantics<parallel>], iteration_bounds = array<i64: 2>, scalar_prefetch = 0 : i64, scratch_operands = 0 : i64, tpu.core_type = #tpu.core_type<tc>, window_params = [{transform_indices = @transform_0, window_bounds = array<i64: 256, 128>}, {pipeline_mode = #tpu.pipeline_mode<synchronous>, transform_indices = @transform_1, window_bounds = array<i64: 128, 128>}, {pipeline_mode = #tpu.pipeline_mode<synchronous>, transform_indices = @transform_2, window_bounds = array<i64: 1, 128>}, {transform_indices = @transform_3, window_bounds = array<i64: 256, 128>}]} {
    %c0 = arith.constant 0 : index
    %c0_0 = arith.constant 0 : index
    %0 = vector.load %arg1[%c0, %c0_0] : memref<256x128xbf16, #tpu.memory_space<vmem>>, vector<256x128xbf16>
    %c0_1 = arith.constant 0 : index
    %c0_2 = arith.constant 0 : index
    %1 = vector.load %arg2[%c0_1, %c0_2] : memref<128x128xbf16, #tpu.memory_space<vmem>>, vector<128x128xbf16>
    %cst = arith.constant dense<0.000000e+00> : vector<256x128xf32>
    %2 = tpu.matmul %0, %1, %cst {dimension_numbers = #tpu.dot_dimension_numbers<[1], [0], [0], [1], [0, 0, 1, 1], [], []>} : vector<256x128xbf16>, vector<128x128xbf16>, vector<256x128xf32> -> vector<256x128xf32>
    %c0_3 = arith.constant 0 : index
    %c0_4 = arith.constant 0 : index
    %3 = vector.load %arg3[%c0_3, %c0_4] : memref<1x128xf32, #tpu.memory_space<vmem>>, vector<1x128xf32>
    %4 = vector.broadcast %3 : vector<1x128xf32> to vector<256x128xf32>
    %5 = arith.addf %2, %4 : vector<256x128xf32>
    %cst_5 = arith.constant 0.000000e+00 : f32
    %6 = vector.broadcast %cst_5 : f32 to vector<256x128xf32>
    %7 = arith.cmpf ogt, %5, %6 : vector<256x128xf32>
    %cst_6 = arith.constant 2.000000e-01 : f32
    %8 = vector.broadcast %cst_6 : f32 to vector<256x128xf32>
    %9 = arith.mulf %8, %5 : vector<256x128xf32>
    %10 = arith.select %7, %5, %9 : vector<256x128xi1>, vector<256x128xf32>
    %11 = arith.truncf %10 : vector<256x128xf32> to vector<256x128xbf16>
    %c0_7 = arith.constant 0 : index
    %c0_8 = arith.constant 0 : index
    %12 = vector.load %arg4[%c0_7, %c0_8] : memref<256x128xbf16, #tpu.memory_space<vmem>>, vector<256x128xbf16>
    tpu.vector_store %arg4[%c0_7, %c0_8], %11 {strides = array<i32>} : memref<256x128xbf16, #tpu.memory_space<vmem>>, vector<256x128xbf16>,
    return
  }
  func.func @transform_0(%arg0: i32) -> (i32, i32) {
    %c0_i32 = arith.constant 0 : i32
    %c0_i32_0 = arith.constant 0 : i32
    return %arg0, %c0_i32 : i32, i32
  }
  func.func @transform_1(%arg0: i32) -> (i32, i32) {
    %c0_i32 = arith.constant 0 : i32
    %c0_i32_0 = arith.constant 0 : i32
    %c0_i32_1 = arith.constant 0 : i32
    return %c0_i32, %c0_i32_0 : i32, i32
  }
  func.func @transform_2(%arg0: i32) -> (i32, i32) {
    %c0_i32 = arith.constant 0 : i32
    %c0_i32_0 = arith.constant 0 : i32
    %c0_i32_1 = arith.constant 0 : i32
    return %c0_i32, %c0_i32_0 : i32, i32
  }
  func.func @transform_3(%arg0: i32) -> (i32, i32) {
    %c0_i32 = arith.constant 0 : i32
    %c0_i32_0 = arith.constant 0 : i32
    return %arg0, %c0_i32 : i32, i32
  }
}

module attributes {stable_mosaic.version = 11 : i64} {
  func.func @_gemm_stats_kernel(%arg0: i32, %arg1: memref<64x128xbf16, #tpu.memory_space<vmem>>, %arg2: memref<128x128xbf16, #tpu.memory_space<vmem>>, %arg3: memref<64x128xbf16, #tpu.memory_space<vmem>>, %arg4: memref<8x128xf32, #tpu.memory_space<vmem>>) attributes {dimension_semantics = [#tpu.dimension_semantics<parallel>], iteration_bounds = array<i64: 2>, scalar_prefetch = 0 : i64, scratch_operands = 0 : i64, tpu.core_type = #tpu.core_type<tc>, window_params = [{transform_indices = @transform_0, window_bounds = array<i64: 64, 128>}, {pipeline_mode = #tpu.pipeline_mode<synchronous>, transform_indices = @transform_1, window_bounds = array<i64: 128, 128>}, {transform_indices = @transform_2, window_bounds = array<i64: 64, 128>}, {transform_indices = @transform_3, window_bounds = array<i64: 8, 128>}]} {
    %c0 = arith.constant 0 : index
    %c0_0 = arith.constant 0 : index
    %0 = vector.load %arg1[%c0, %c0_0] : memref<64x128xbf16, #tpu.memory_space<vmem>>, vector<64x128xbf16>
    %c0_1 = arith.constant 0 : index
    %c0_2 = arith.constant 0 : index
    %1 = vector.load %arg2[%c0_1, %c0_2] : memref<128x128xbf16, #tpu.memory_space<vmem>>, vector<128x128xbf16>
    %cst = arith.constant dense<0.000000e+00> : vector<64x128xf32>
    %2 = tpu.matmul %0, %1, %cst {dimension_numbers = #tpu.dot_dimension_numbers<[1], [0], [0], [1], [0, 0, 1, 1], [], []>} : vector<64x128xbf16>, vector<128x128xbf16>, vector<64x128xf32> -> vector<64x128xf32>
    %3 = arith.truncf %2 : vector<64x128xf32> to vector<64x128xbf16>
    %c0_3 = arith.constant 0 : index
    %c0_4 = arith.constant 0 : index
    %4 = vector.load %arg3[%c0_3, %c0_4] : memref<64x128xbf16, #tpu.memory_space<vmem>>, vector<64x128xbf16>
    tpu.vector_store %arg3[%c0_3, %c0_4], %3 {strides = array<i32>} : memref<64x128xbf16, #tpu.memory_space<vmem>>, vector<64x128xbf16>,
    %cst_5 = arith.constant dense<0.000000e+00> : vector<128xf32>
    %5 = vector.multi_reduction <add>, %2, %cst_5 [0] : vector<64x128xf32> to vector<128xf32>
    %6 = vector.shape_cast %5 : vector<128xf32> to vector<1x128xf32>
    %7 = arith.mulf %2, %2 : vector<64x128xf32>
    %cst_6 = arith.constant dense<0.000000e+00> : vector<128xf32>
    %8 = vector.multi_reduction <add>, %7, %cst_6 [0] : vector<64x128xf32> to vector<128xf32>
    %9 = vector.shape_cast %8 : vector<128xf32> to vector<1x128xf32>
    %10 = tpu.iota {dimensions = array<i32: 0>} : vector<8x128xi32>
    %11 = vector.shape_cast %6 : vector<1x128xf32> to vector<1x128xf32>
    %12 = vector.broadcast %11 : vector<1x128xf32> to vector<8x128xf32>
    %13 = vector.shape_cast %9 : vector<1x128xf32> to vector<1x128xf32>
    %14 = vector.broadcast %13 : vector<1x128xf32> to vector<8x128xf32>
    %cst_7 = arith.constant 0.000000e+00 : f32
    %15 = vector.broadcast %cst_7 : f32 to vector<8x128xf32>
    %c0_i32 = arith.constant 0 : i32
    %16 = vector.broadcast %c0_i32 : i32 to vector<8x128xi32>
    %17 = arith.cmpi eq, %10, %16 : vector<8x128xi32>
    %c1_i32 = arith.constant 1 : i32
    %18 = vector.broadcast %c1_i32 : i32 to vector<8x128xi32>
    %19 = arith.cmpi eq, %10, %18 : vector<8x128xi32>
    %20 = arith.select %19, %14, %15 : vector<8x128xi1>, vector<8x128xf32>
    %21 = arith.select %17, %12, %20 : vector<8x128xi1>, vector<8x128xf32>
    %c0_8 = arith.constant 0 : index
    %c0_9 = arith.constant 0 : index
    %22 = vector.load %arg4[%c0_8, %c0_9] : memref<8x128xf32, #tpu.memory_space<vmem>>, vector<8x128xf32>
    tpu.vector_store %arg4[%c0_8, %c0_9], %21 {strides = array<i32>} : memref<8x128xf32, #tpu.memory_space<vmem>>, vector<8x128xf32>,
    return
  }
  func.func @transform_0(%arg0: i32) -> (i32, i32) {
    %c0_i32 = arith.constant 0 : i32
    %c0_i32_0 = arith.constant 0 : i32
    return %arg0, %c0_i32 : i32, i32
  }
  func.func @transform_1(%arg0: i32) -> (i32, i32) {
    %c0_i32 = arith.constant 0 : i32
    %c0_i32_0 = arith.constant 0 : i32
    %c0_i32_1 = arith.constant 0 : i32
    return %c0_i32, %c0_i32_0 : i32, i32
  }
  func.func @transform_2(%arg0: i32) -> (i32, i32) {
    %c0_i32 = arith.constant 0 : i32
    %c0_i32_0 = arith.constant 0 : i32
    return %arg0, %c0_i32 : i32, i32
  }
  func.func @transform_3(%arg0: i32) -> (i32, i32) {
    %c0_i32 = arith.constant 0 : i32
    %c0_i32_0 = arith.constant 0 : i32
    return %arg0, %c0_i32 : i32, i32
  }
}

module attributes {stable_mosaic.version = 11 : i64} {
  func.func @_gemm_stats_kernel(%arg0: i32, %arg1: memref<16x256xbf16, #tpu.memory_space<vmem>>, %arg2: memref<256x128xbf16, #tpu.memory_space<vmem>>, %arg3: memref<16x128xbf16, #tpu.memory_space<vmem>>, %arg4: memref<8x128xf32, #tpu.memory_space<vmem>>) attributes {dimension_semantics = [#tpu.dimension_semantics<parallel>], iteration_bounds = array<i64: 2>, scalar_prefetch = 0 : i64, scratch_operands = 0 : i64, tpu.core_type = #tpu.core_type<tc>, window_params = [{transform_indices = @transform_0, window_bounds = array<i64: 16, 256>}, {pipeline_mode = #tpu.pipeline_mode<synchronous>, transform_indices = @transform_1, window_bounds = array<i64: 256, 128>}, {transform_indices = @transform_2, window_bounds = array<i64: 16, 128>}, {transform_indices = @transform_3, window_bounds = array<i64: 8, 128>}]} {
    %c0 = arith.constant 0 : index
    %c0_0 = arith.constant 0 : index
    %0 = vector.load %arg1[%c0, %c0_0] : memref<16x256xbf16, #tpu.memory_space<vmem>>, vector<16x256xbf16>
    %c0_1 = arith.constant 0 : index
    %c0_2 = arith.constant 0 : index
    %1 = vector.load %arg2[%c0_1, %c0_2] : memref<256x128xbf16, #tpu.memory_space<vmem>>, vector<256x128xbf16>
    %cst = arith.constant dense<0.000000e+00> : vector<16x128xf32>
    %2 = tpu.matmul %0, %1, %cst {dimension_numbers = #tpu.dot_dimension_numbers<[1], [0], [0], [1], [0, 0, 1, 1], [], []>} : vector<16x256xbf16>, vector<256x128xbf16>, vector<16x128xf32> -> vector<16x128xf32>
    %3 = arith.truncf %2 : vector<16x128xf32> to vector<16x128xbf16>
    %c0_3 = arith.constant 0 : index
    %c0_4 = arith.constant 0 : index
    %4 = vector.load %arg3[%c0_3, %c0_4] : memref<16x128xbf16, #tpu.memory_space<vmem>>, vector<16x128xbf16>
    tpu.vector_store %arg3[%c0_3, %c0_4], %3 {strides = array<i32>} : memref<16x128xbf16, #tpu.memory_space<vmem>>, vector<16x128xbf16>,
    %cst_5 = arith.constant dense<0.000000e+00> : vector<128xf32>
    %5 = vector.multi_reduction <add>, %2, %cst_5 [0] : vector<16x128xf32> to vector<128xf32>
    %6 = vector.shape_cast %5 : vector<128xf32> to vector<1x128xf32>
    %7 = arith.mulf %2, %2 : vector<16x128xf32>
    %cst_6 = arith.constant dense<0.000000e+00> : vector<128xf32>
    %8 = vector.multi_reduction <add>, %7, %cst_6 [0] : vector<16x128xf32> to vector<128xf32>
    %9 = vector.shape_cast %8 : vector<128xf32> to vector<1x128xf32>
    %10 = tpu.iota {dimensions = array<i32: 0>} : vector<8x128xi32>
    %11 = vector.shape_cast %6 : vector<1x128xf32> to vector<1x128xf32>
    %12 = vector.broadcast %11 : vector<1x128xf32> to vector<8x128xf32>
    %13 = vector.shape_cast %9 : vector<1x128xf32> to vector<1x128xf32>
    %14 = vector.broadcast %13 : vector<1x128xf32> to vector<8x128xf32>
    %cst_7 = arith.constant 0.000000e+00 : f32
    %15 = vector.broadcast %cst_7 : f32 to vector<8x128xf32>
    %c0_i32 = arith.constant 0 : i32
    %16 = vector.broadcast %c0_i32 : i32 to vector<8x128xi32>
    %17 = arith.cmpi eq, %10, %16 : vector<8x128xi32>
    %c1_i32 = arith.constant 1 : i32
    %18 = vector.broadcast %c1_i32 : i32 to vector<8x128xi32>
    %19 = arith.cmpi eq, %10, %18 : vector<8x128xi32>
    %20 = arith.select %19, %14, %15 : vector<8x128xi1>, vector<8x128xf32>
    %21 = arith.select %17, %12, %20 : vector<8x128xi1>, vector<8x128xf32>
    %c0_8 = arith.constant 0 : index
    %c0_9 = arith.constant 0 : index
    %22 = vector.load %arg4[%c0_8, %c0_9] : memref<8x128xf32, #tpu.memory_space<vmem>>, vector<8x128xf32>
    tpu.vector_store %arg4[%c0_8, %c0_9], %21 {strides = array<i32>} : memref<8x128xf32, #tpu.memory_space<vmem>>, vector<8x128xf32>,
    return
  }
  func.func @transform_0(%arg0: i32) -> (i32, i32) {
    %c0_i32 = arith.constant 0 : i32
    %c0_i32_0 = arith.constant 0 : i32
    return %arg0, %c0_i32 : i32, i32
  }
  func.func @transform_1(%arg0: i32) -> (i32, i32) {
    %c0_i32 = arith.constant 0 : i32
    %c0_i32_0 = arith.constant 0 : i32
    %c0_i32_1 = arith.constant 0 : i32
    return %c0_i32, %c0_i32_0 : i32, i32
  }
  func.func @transform_2(%arg0: i32) -> (i32, i32) {
    %c0_i32 = arith.constant 0 : i32
    %c0_i32_0 = arith.constant 0 : i32
    return %arg0, %c0_i32 : i32, i32
  }
  func.func @transform_3(%arg0: i32) -> (i32, i32) {
    %c0_i32 = arith.constant 0 : i32
    %c0_i32_0 = arith.constant 0 : i32
    return %arg0, %c0_i32 : i32, i32
  }
}

module attributes {stable_mosaic.version = 11 : i64} {
  func.func @_gemm_stats_kernel(%arg0: i32, %arg1: memref<16x512xbf16, #tpu.memory_space<vmem>>, %arg2: memref<512x128xbf16, #tpu.memory_space<vmem>>, %arg3: memref<16x128xbf16, #tpu.memory_space<vmem>>, %arg4: memref<8x128xf32, #tpu.memory_space<vmem>>) attributes {dimension_semantics = [#tpu.dimension_semantics<parallel>], iteration_bounds = array<i64: 2>, scalar_prefetch = 0 : i64, scratch_operands = 0 : i64, tpu.core_type = #tpu.core_type<tc>, window_params = [{transform_indices = @transform_0, window_bounds = array<i64: 16, 512>}, {pipeline_mode = #tpu.pipeline_mode<synchronous>, transform_indices = @transform_1, window_bounds = array<i64: 512, 128>}, {transform_indices = @transform_2, window_bounds = array<i64: 16, 128>}, {transform_indices = @transform_3, window_bounds = array<i64: 8, 128>}]} {
    %c0 = arith.constant 0 : index
    %c0_0 = arith.constant 0 : index
    %0 = vector.load %arg1[%c0, %c0_0] : memref<16x512xbf16, #tpu.memory_space<vmem>>, vector<16x512xbf16>
    %c0_1 = arith.constant 0 : index
    %c0_2 = arith.constant 0 : index
    %1 = vector.load %arg2[%c0_1, %c0_2] : memref<512x128xbf16, #tpu.memory_space<vmem>>, vector<512x128xbf16>
    %cst = arith.constant dense<0.000000e+00> : vector<16x128xf32>
    %2 = tpu.matmul %0, %1, %cst {dimension_numbers = #tpu.dot_dimension_numbers<[1], [0], [0], [1], [0, 0, 1, 1], [], []>} : vector<16x512xbf16>, vector<512x128xbf16>, vector<16x128xf32> -> vector<16x128xf32>
    %3 = arith.truncf %2 : vector<16x128xf32> to vector<16x128xbf16>
    %c0_3 = arith.constant 0 : index
    %c0_4 = arith.constant 0 : index
    %4 = vector.load %arg3[%c0_3, %c0_4] : memref<16x128xbf16, #tpu.memory_space<vmem>>, vector<16x128xbf16>
    tpu.vector_store %arg3[%c0_3, %c0_4], %3 {strides = array<i32>} : memref<16x128xbf16, #tpu.memory_space<vmem>>, vector<16x128xbf16>,
    %cst_5 = arith.constant dense<0.000000e+00> : vector<128xf32>
    %5 = vector.multi_reduction <add>, %2, %cst_5 [0] : vector<16x128xf32> to vector<128xf32>
    %6 = vector.shape_cast %5 : vector<128xf32> to vector<1x128xf32>
    %7 = arith.mulf %2, %2 : vector<16x128xf32>
    %cst_6 = arith.constant dense<0.000000e+00> : vector<128xf32>
    %8 = vector.multi_reduction <add>, %7, %cst_6 [0] : vector<16x128xf32> to vector<128xf32>
    %9 = vector.shape_cast %8 : vector<128xf32> to vector<1x128xf32>
    %10 = tpu.iota {dimensions = array<i32: 0>} : vector<8x128xi32>
    %11 = vector.shape_cast %6 : vector<1x128xf32> to vector<1x128xf32>
    %12 = vector.broadcast %11 : vector<1x128xf32> to vector<8x128xf32>
    %13 = vector.shape_cast %9 : vector<1x128xf32> to vector<1x128xf32>
    %14 = vector.broadcast %13 : vector<1x128xf32> to vector<8x128xf32>
    %cst_7 = arith.constant 0.000000e+00 : f32
    %15 = vector.broadcast %cst_7 : f32 to vector<8x128xf32>
    %c0_i32 = arith.constant 0 : i32
    %16 = vector.broadcast %c0_i32 : i32 to vector<8x128xi32>
    %17 = arith.cmpi eq, %10, %16 : vector<8x128xi32>
    %c1_i32 = arith.constant 1 : i32
    %18 = vector.broadcast %c1_i32 : i32 to vector<8x128xi32>
    %19 = arith.cmpi eq, %10, %18 : vector<8x128xi32>
    %20 = arith.select %19, %14, %15 : vector<8x128xi1>, vector<8x128xf32>
    %21 = arith.select %17, %12, %20 : vector<8x128xi1>, vector<8x128xf32>
    %c0_8 = arith.constant 0 : index
    %c0_9 = arith.constant 0 : index
    %22 = vector.load %arg4[%c0_8, %c0_9] : memref<8x128xf32, #tpu.memory_space<vmem>>, vector<8x128xf32>
    tpu.vector_store %arg4[%c0_8, %c0_9], %21 {strides = array<i32>} : memref<8x128xf32, #tpu.memory_space<vmem>>, vector<8x128xf32>,
    return
  }
  func.func @transform_0(%arg0: i32) -> (i32, i32) {
    %c0_i32 = arith.constant 0 : i32
    %c0_i32_0 = arith.constant 0 : i32
    return %arg0, %c0_i32 : i32, i32
  }
  func.func @transform_1(%arg0: i32) -> (i32, i32) {
    %c0_i32 = arith.constant 0 : i32
    %c0_i32_0 = arith.constant 0 : i32
    %c0_i32_1 = arith.constant 0 : i32
    return %c0_i32, %c0_i32_0 : i32, i32
  }
  func.func @transform_2(%arg0: i32) -> (i32, i32) {
    %c0_i32 = arith.constant 0 : i32
    %c0_i32_0 = arith.constant 0 : i32
    return %arg0, %c0_i32 : i32, i32
  }
  func.func @transform_3(%arg0: i32) -> (i32, i32) {
    %c0_i32 = arith.constant 0 : i32
    %c0_i32_0 = arith.constant 0 : i32
    return %arg0, %c0_i32 : i32, i32
  }
}

module attributes {stable_mosaic.version = 11 : i64} {
  func.func @_gemm_bias_kernel(%arg0: i32, %arg1: memref<8x1024xbf16, #tpu.memory_space<vmem>>, %arg2: memref<1024x128xbf16, #tpu.memory_space<vmem>>, %arg3: memref<1x128xf32, #tpu.memory_space<vmem>>, %arg4: memref<8x128xbf16, #tpu.memory_space<vmem>>) attributes {dimension_semantics = [#tpu.dimension_semantics<parallel>], iteration_bounds = array<i64: 1>, scalar_prefetch = 0 : i64, scratch_operands = 0 : i64, tpu.core_type = #tpu.core_type<tc>, window_params = [{transform_indices = @transform_0, window_bounds = array<i64: 8, 1024>}, {pipeline_mode = #tpu.pipeline_mode<synchronous>, transform_indices = @transform_1, window_bounds = array<i64: 1024, 128>}, {pipeline_mode = #tpu.pipeline_mode<synchronous>, transform_indices = @transform_2, window_bounds = array<i64: 1, 128>}, {transform_indices = @transform_3, window_bounds = array<i64: 8, 128>}]} {
    %c0 = arith.constant 0 : index
    %c0_0 = arith.constant 0 : index
    %0 = vector.load %arg1[%c0, %c0_0] : memref<8x1024xbf16, #tpu.memory_space<vmem>>, vector<8x1024xbf16>
    %c0_1 = arith.constant 0 : index
    %c0_2 = arith.constant 0 : index
    %1 = vector.load %arg2[%c0_1, %c0_2] : memref<1024x128xbf16, #tpu.memory_space<vmem>>, vector<1024x128xbf16>
    %cst = arith.constant dense<0.000000e+00> : vector<8x128xf32>
    %2 = tpu.matmul %0, %1, %cst {dimension_numbers = #tpu.dot_dimension_numbers<[1], [0], [0], [1], [0, 0, 1, 1], [], []>} : vector<8x1024xbf16>, vector<1024x128xbf16>, vector<8x128xf32> -> vector<8x128xf32>
    %c0_3 = arith.constant 0 : index
    %c0_4 = arith.constant 0 : index
    %3 = vector.load %arg3[%c0_3, %c0_4] : memref<1x128xf32, #tpu.memory_space<vmem>>, vector<1x128xf32>
    %4 = vector.broadcast %3 : vector<1x128xf32> to vector<8x128xf32>
    %5 = arith.addf %2, %4 : vector<8x128xf32>
    %6 = arith.truncf %5 : vector<8x128xf32> to vector<8x128xbf16>
    %c0_5 = arith.constant 0 : index
    %c0_6 = arith.constant 0 : index
    %7 = vector.load %arg4[%c0_5, %c0_6] : memref<8x128xbf16, #tpu.memory_space<vmem>>, vector<8x128xbf16>
    tpu.vector_store %arg4[%c0_5, %c0_6], %6 {strides = array<i32>} : memref<8x128xbf16, #tpu.memory_space<vmem>>, vector<8x128xbf16>,
    return
  }
  func.func @transform_0(%arg0: i32) -> (i32, i32) {
    %c0_i32 = arith.constant 0 : i32
    %c0_i32_0 = arith.constant 0 : i32
    return %arg0, %c0_i32 : i32, i32
  }
  func.func @transform_1(%arg0: i32) -> (i32, i32) {
    %c0_i32 = arith.constant 0 : i32
    %c0_i32_0 = arith.constant 0 : i32
    %c0_i32_1 = arith.constant 0 : i32
    return %c0_i32, %c0_i32_0 : i32, i32
  }
  func.func @transform_2(%arg0: i32) -> (i32, i32) {
    %c0_i32 = arith.constant 0 : i32
    %c0_i32_0 = arith.constant 0 : i32
    %c0_i32_1 = arith.constant 0 : i32
    return %c0_i32, %c0_i32_0 : i32, i32
  }
  func.func @transform_3(%arg0: i32) -> (i32, i32) {
    %c0_i32 = arith.constant 0 : i32
    %c0_i32_0 = arith.constant 0 : i32
    return %arg0, %c0_i32 : i32, i32
  }
}

</mosaic_0001>

<bundles_post_ra>
// kernel: _lambda_.5
= control target key start
LH: loop header
LB: loop body
LE: loop exit
PB: predicated region body
PF: predicated region fallthrough
CT: control target
= control target key end

     0   :  { %s1190_s12 = smov 0   ;;  %s1315_s0 = inlined_call_operand.vmem [shape: bf16[512,128], index: 0, kind: input, shape index: {}]   ;;  %s1316_s1 = inlined_call_operand.vmem [shape: bf16[128,128], index: 1, kind: input, shape index: {}]   ;;  %s1317_s2 = inlined_call_operand.vmem [shape: f32[1,128], index: 2, kind: input, shape index: {}]   ;;  %s1318_s3 = inlined_call_operand.vmem [shape: bf16[512,128], index: 3, kind: output, shape index: {}]  }
   0x1 LB: > { %s847_s13 = sadd.s32 4294967295, %s1168_s12   ;;  %p851_p0 = scmp.ge.s32.totalorder %s1168_s12, 1  ;;  %s1168_s12 = sphi %s1190_s12, %s13_s12  }
   0x2   : > { %p138_p1 = scmp.lt.s32.totalorder %s1168_s12, 3 }
   0x4   : > { %p139_p2 = pnand %p851_p0, %p138_p1 }
   0x5   : > { %s852_s16 = sshll.u32 (!%p139_p2), %s847_s13, 5 }
   0x6   : > { %142 = sbr.rel (%p139_p2) target bundleno = 279 (0x117), region = 32  ;;  %p163_p3 = scmp.lt.s32.totalorder (!%p139_p2), %s852_s16, 63 }
   0xb   : > { %v1138_v0 = vld [vmem:[%s1316_s1 + $0x38] sm:$0xff]   ;;  %v1139_v1 = vld [vmem:[%s1316_s1 + $0x30] sm:$0xff]   ;;  %s1320_s16 = smov (!%p163_p3, %s852_s16), 63  ;;  %v1140_v2 = vld [vmem:[%s1316_s1 + $0x28] sm:$0xff]  }
   0xc   : > { %1066 = vmatprep.subr.bf16.mxu0 %v1138_v0  ;;  %1114 = vmatprep.subr.bf16.mxu1 %v1138_v0  ;;  %s853_s21 = sshll.u32 %s1320_s16, 2  ;;  %v1141_v3 = vld [vmem:[%s1316_s1 + $0x20] sm:$0xff]   ;;  %v1142_v6 = vld [vmem:[%s1316_s1 + $0x18] sm:$0xff]   ;;  %v1143_v7 = vld [vmem:[%s1316_s1 + $0x10] sm:$0xff]  }
   0xd   : > { %1067 = vmatpush3.bf16.msra.mxu0 %v1138_v0  ;;  %1122 = vmatpush3.bf16.msra.mxu1 %v1138_v0  ;;  %s1215_s24 = scalar_lea.vmem %s1315_s0, %s853_s21  ;;  %v1144_v8 = vld [vmem:[%s1316_s1 + $0x8] sm:$0xff]   ;;  %v1145_v9 = vld [vmem:[%s1316_s1] sm:$0xff]   ;;  %s1266_s13 = scalar_lea.vmem %s1318_s3, %s853_s21 }
   0xe   : > { %1068 = vmatprep.subr.bf16.mxu0 %v1139_v1  ;;  %1115 = vmatprep.subr.bf16.mxu1 %v1139_v1  ;;  %v1146_v4 = vld [vmem:[%s1215_s24] sm:$0xff]   ;;  %v1148_v10 = vld [vmem:[%s1215_s24 + $0x8] sm:$0xff]   ;;  %v1150_v12 = vld [vmem:[%s1215_s24 + $0x10] sm:$0xff]  }
   0xf   : > { %v1147_v5 = vld [vmem:[%s1215_s24 + $0x40] sm:$0xff]   ;;  %1082 = vmatprep.mubr.bf16.mxu0 %v1146_v4  ;;  %v1149_v11 = vld [vmem:[%s1215_s24 + $0x48] sm:$0xff]   ;;  %v1151_v13 = vld [vmem:[%s1215_s24 + $0x50] sm:$0xff]  }
  0x10   : > { %1098 = vmatprep.mubr.bf16.mxu1 %v1147_v5  ;;  %v1152_v14 = vld [vmem:[%s1215_s24 + $0x18] sm:$0xff]   ;;  %v1154_v16 = vld [vmem:[%s1215_s24 + $0x20] sm:$0xff]   ;;  %v1156_v18 = vld [vmem:[%s1215_s24 + $0x28] sm:$0xff]  }
  0x11   : > { %1069 = vmatpush3.bf16.msra.mxu0 %v1139_v1  ;;  %1123 = vmatpush3.bf16.msra.mxu1 %v1139_v1  ;;  %v1153_v15 = vld [vmem:[%s1215_s24 + $0x58] sm:$0xff]   ;;  %v1155_v17 = vld [vmem:[%s1215_s24 + $0x60] sm:$0xff]   ;;  %v1157_v19 = vld [vmem:[%s1215_s24 + $0x68] sm:$0xff]  }
  0x12   : > { %1070 = vmatprep.subr.bf16.mxu0 %v1140_v2  ;;  %1116 = vmatprep.subr.bf16.mxu1 %v1140_v2  ;;  %v1158_v20 = vld [vmem:[%s1215_s24 + $0x30] sm:$0xff]   ;;  %v1160_v22 = vld [vmem:[%s1215_s24 + $0x38] sm:$0xff]   ;;  %v1251_v24 = vld [vmem:[%s1317_s2] ss:$0 sm:$0xff] }
  0x13   : > { %v1159_v21 = vld [vmem:[%s1215_s24 + $0x70] sm:$0xff]   ;;  %v1161_v23 = vld [vmem:[%s1215_s24 + $0x78] sm:$0xff]  }
  0x15   : > { %1071 = vmatpush3.bf16.msra.mxu0 %v1140_v2  ;;  %1124 = vmatpush3.bf16.msra.mxu1 %v1140_v2 }
  0x16   : > { %1072 = vmatprep.subr.bf16.mxu0 %v1141_v3  ;;  %1117 = vmatprep.subr.bf16.mxu1 %v1141_v3 }
  0x19   : > { %1073 = vmatpush3.bf16.msra.mxu0 %v1141_v3  ;;  %1125 = vmatpush3.bf16.msra.mxu1 %v1141_v3 }
  0x1a   : > { %1074 = vmatprep.subr.bf16.mxu0 %v1142_v6  ;;  %1118 = vmatprep.subr.bf16.mxu1 %v1142_v6 }
  0x1d   : > { %1075 = vmatpush3.bf16.msra.mxu0 %v1142_v6  ;;  %1126 = vmatpush3.bf16.msra.mxu1 %v1142_v6 }
  0x1e   : > { %1076 = vmatprep.subr.bf16.mxu0 %v1143_v7  ;;  %1119 = vmatprep.subr.bf16.mxu1 %v1143_v7 }
  0x21   : > { %1077 = vmatpush3.bf16.msra.mxu0 %v1143_v7  ;;  %1127 = vmatpush3.bf16.msra.mxu1 %v1143_v7 }
  0x22   : > { %1078 = vmatprep.subr.bf16.mxu0 %v1144_v8  ;;  %1120 = vmatprep.subr.bf16.mxu1 %v1144_v8 }
  0x25   : > { %1079 = vmatpush3.bf16.msra.mxu0 %v1144_v8  ;;  %1128 = vmatpush3.bf16.msra.mxu1 %v1144_v8 }
  0x26   : > { %1080 = vmatprep.subr.bf16.mxu0 %v1145_v9  ;;  %1121 = vmatprep.subr.bf16.mxu1 %v1145_v9 }
  0x29   : > { %1081 = vmatpush3.bf16.msra.mxu0 %v1145_v9  ;;  %1129 = vmatpush3.bf16.msra.mxu1 %v1145_v9 }
  0x2c   : > { %1083 = vmatmul.mubr.bf16.vlgmr.msra.gmra.mxu0 %v1148_v10  ;;  %1099 = vmatmul.mubr.bf16.vlgmr.msra.gmra.mxu1 %v1149_v11 }
  0x2d   : > { %1086 = vmatprep.mubr.bf16.mxu0 %v1150_v12  ;;  %1102 = vmatprep.mubr.bf16.mxu1 %v1151_v13 }
  0x34   : > { %1087 = vmatmul.mubr.bf16.gmra.mxu0 %v1152_v14  ;;  %1103 = vmatmul.mubr.bf16.gmra.mxu1 %v1153_v15 }
  0x35   : > { %1090 = vmatprep.mubr.bf16.mxu0 %v1154_v16  ;;  %1106 = vmatprep.mubr.bf16.mxu1 %v1155_v17 }
  0x3c   : > { %1091 = vmatmul.mubr.bf16.gmra.mxu0 %v1156_v18  ;;  %1107 = vmatmul.mubr.bf16.gmra.mxu1 %v1157_v19 }
  0x3d   : > { %1094 = vmatprep.mubr.bf16.mxu0 %v1158_v20  ;;  %1110 = vmatprep.mubr.bf16.mxu1 %v1159_v21 }
  0x44   : > { %1095 = vmatmul.mubr.bf16.gmra.mxu0 %v1160_v22  ;;  %1111 = vmatmul.mubr.bf16.gmra.mxu1 %v1161_v23 }
  0xec   : > { %v1084_v25 = vpop.f32.mrf.mxu0  ;;  %v1100_v26 = vpop.f32.mrf.mxu1 }
  0xed   : > { %v417_v27 = vadd.f32 %v1084_v25, %v1251_v24  ;;  %v481_v28 = vadd.f32 %v1100_v26, %v1251_v24 }
  0xee   : > { %v408_v29 = vpop.f32.mrf.mxu0  ;;  %v472_v30 = vpop.f32.mrf.mxu1 }
  0xef   : > { %vm537_vm0 = vcmp.gt.f32.partialorder %v417_v27, 0.0  ;;  %v569_v31 = vmul.f32 0.2, %v417_v27  ;;  %vm553_vm1 = vcmp.gt.f32.partialorder %v481_v28, 0.0  ;;  %v585_v32 = vmul.f32 0.2, %v481_v28 }
  0xf0   : > { %v409_v33 = vadd.f32 %v1251_v24, %v408_v29  ;;  %v473_v34 = vadd.f32 %v1251_v24, %v472_v30  ;;  %v1085_v35 = vpop.f32.mrf.mxu0  ;;  %v1101_v36 = vpop.f32.mrf.mxu1 }
  0xf1   : > { %v601_v37 = vsel %vm537_vm0, %v417_v27, %v569_v31  ;;  %v420_v38 = vadd.f32 %v1085_v35, %v1251_v24  ;;  %v484_v39 = vadd.f32 %v1101_v36, %v1251_v24  ;;  %v617_v40 = vsel %vm553_vm1, %v481_v28, %v585_v32 }
  0xf2   : > { %vm535_vm2 = vcmp.gt.f32.partialorder %v409_v33, 0.0  ;;  %v567_v41 = vmul.f32 0.2, %v409_v33  ;;  %vm551_vm3 = vcmp.gt.f32.partialorder %v473_v34, 0.0  ;;  %v411_v42 = vpop.f32.mrf.mxu0  ;;  %v475_v43 = vpop.f32.mrf.mxu1  ;;  %v583_v47 = vmul.f32 0.2, %v473_v34 }
  0xf3   : > { %vm538_vm4 = vcmp.gt.f32.partialorder %v420_v38, 0.0  ;;  %v570_v44 = vmul.f32 0.2, %v420_v38  ;;  %vm554_vm5 = vcmp.gt.f32.partialorder %v484_v39, 0.0  ;;  %v586_v45 = vmul.f32 0.2, %v484_v39 }
  0xf4   : > { %v599_v46 = vsel %vm535_vm2, %v409_v33, %v567_v41  ;;  %v412_v48 = vadd.f32 %v1251_v24, %v411_v42  ;;  %v476_v49 = vadd.f32 %v1251_v24, %v475_v43  ;;  %v1088_v50 = vpop.f32.mrf.mxu0  ;;  %v1104_v51 = vpop.f32.mrf.mxu1  ;;  %v615_v63 = vsel %vm551_vm3, %v473_v34, %v583_v47 }
  0xf5   : > { %v602_v52 = vsel %vm538_vm4, %v420_v38, %v570_v44  ;;  %v618_v53 = vsel %vm554_vm5, %v484_v39, %v586_v45  ;;  %v433_v54 = vadd.f32 %v1088_v50, %v1251_v24  ;;  %v497_v55 = vadd.f32 %v1104_v51, %v1251_v24 }
  0xf6   : > { %v955_v56 = vpack.c.bf16 %v602_v52, %v601_v37  ;;  %v995_v57 = vpack.c.bf16 %v618_v53, %v617_v40  ;;  %vm536_vm6 = vcmp.gt.f32.partialorder %v412_v48, 0.0  ;;  %v568_v58 = vmul.f32 0.2, %v412_v48  ;;  %v424_v59 = vpop.f32.mrf.mxu0  ;;  %v488_v60 = vpop.f32.mrf.mxu1 }
  0xf7   : > { %vm552_vm7 = vcmp.gt.f32.partialorder %v476_v49, 0.0  ;;  %v584_v61 = vmul.f32 0.2, %v476_v49  ;;  %vm541_vm8 = vcmp.gt.f32.partialorder %v433_v54, 0.0  ;;  %v573_v62 = vmul.f32 0.2, %v433_v54 }
  0xf8   : > { %1027 = vst [vmem:[%s1266_s13 + $0x8] sm:$0xff] %v955_v56   ;;  %1035 = vst [vmem:[%s1266_s13 + $0x48] sm:$0xff] %v995_v57   ;;  %v600_v0 = vsel %vm536_vm6, %v412_v48, %v568_v58  ;;  %v589_v1 = vmul.f32 0.2, %v497_v55  ;;  %v425_v2 = vadd.f32 %v1251_v24, %v424_v59  ;;  %v1089_v3 = vpop.f32.mrf.mxu0  ;;  %v1105_v4 = vpop.f32.mrf.mxu1  ;;  %vm557_vm9 = vcmp.gt.f32.partialorder %v497_v55, 0.0 }
  0xf9   : > { %v950_v5 = vpack.c.bf16 %v600_v0, %v599_v46  ;;  %v616_v6 = vsel %vm552_vm7, %v476_v49, %v584_v61  ;;  %v489_v7 = vadd.f32 %v1251_v24, %v488_v60  ;;  %v605_v9 = vsel %vm541_vm8, %v433_v54, %v573_v62 }
  0xfa   : > { %v990_v8 = vpack.c.bf16 %v616_v6, %v615_v63  ;;  %vm539_vm10 = vcmp.gt.f32.partialorder %v425_v2, 0.0  ;;  %v571_v10 = vmul.f32 0.2, %v425_v2  ;;  %v427_v11 = vpop.f32.mrf.mxu0  ;;  %v491_v12 = vpop.f32.mrf.mxu1  ;;  %v436_v14 = vadd.f32 %v1089_v3, %v1251_v24 }
  0xfb   : > { %951 = vst [vmem:[%s1266_s13] sm:$0xff] %v950_v5   ;;  %vm555_vm11 = vcmp.gt.f32.partialorder %v489_v7, 0.0  ;;  %v587_v13 = vmul.f32 0.2, %v489_v7  ;;  %v500_v15 = vadd.f32 %v1105_v4, %v1251_v24  ;;  %v621_v16 = vsel %vm557_vm9, %v497_v55, %v589_v1 }
  0xfc   : > { %1034 = vst [vmem:[%s1266_s13 + $0x40] sm:$0xff] %v990_v8   ;;  %v603_v17 = vsel %vm539_vm10, %v425_v2, %v571_v10  ;;  %v428_v18 = vadd.f32 %v1251_v24, %v427_v11  ;;  %v492_v19 = vadd.f32 %v1251_v24, %v491_v12  ;;  %v1092_v20 = vpop.f32.mrf.mxu0  ;;  %v1108_v21 = vpop.f32.mrf.mxu1  ;;  %vm542_vm12 = vcmp.gt.f32.partialorder %v436_v14, 0.0 }
  0xfd   : > { %v619_v22 = vsel %vm555_vm11, %v489_v7, %v587_v13  ;;  %v574_v23 = vmul.f32 0.2, %v436_v14  ;;  %vm558_vm13 = vcmp.gt.f32.partialorder %v500_v15, 0.0  ;;  %v590_v25 = vmul.f32 0.2, %v500_v15 }
  0xfe   : > { %vm540_vm14 = vcmp.gt.f32.partialorder %v428_v18, 0.0  ;;  %v572_v26 = vmul.f32 0.2, %v428_v18  ;;  %vm556_vm15 = vcmp.gt.f32.partialorder %v492_v19, 0.0  ;;  %v440_v27 = vpop.f32.mrf.mxu0  ;;  %v504_v28 = vpop.f32.mrf.mxu1  ;;  %v588_v30 = vmul.f32 0.2, %v492_v19 }
  0xff   : > { %v606_v29 = vsel %vm542_vm12, %v436_v14, %v574_v23  ;;  %v449_v31 = vadd.f32 %v1092_v20, %v1251_v24  ;;  %v513_v32 = vadd.f32 %v1108_v21, %v1251_v24  ;;  %v622_v34 = vsel %vm558_vm13, %v500_v15, %v590_v25 }
 0x100   : > { %v965_v33 = vpack.c.bf16 %v606_v29, %v605_v9  ;;  %v604_v35 = vsel %vm540_vm14, %v428_v18, %v572_v26  ;;  %v441_v36 = vadd.f32 %v1251_v24, %v440_v27  ;;  %v1093_v37 = vpop.f32.mrf.mxu0  ;;  %v1109_v38 = vpop.f32.mrf.mxu1  ;;  %v1005_v39 = vpack.c.bf16 %v622_v34, %v621_v16 }
 0x101   : > { %v960_v40 = vpack.c.bf16 %v604_v35, %v603_v17  ;;  %v620_v41 = vsel %vm556_vm15, %v492_v19, %v588_v30  ;;  %vm545_vm0 = vcmp.gt.f32.partialorder %v449_v31, 0.0  ;;  %v577_v43 = vmul.f32 0.2, %v449_v31 }
 0x102   : > { %1029 = vst [vmem:[%s1266_s13 + $0x18] sm:$0xff] %v965_v33   ;;  %v1000_v42 = vpack.c.bf16 %v620_v41, %v619_v22  ;;  %vm561_vm1 = vcmp.gt.f32.partialorder %v513_v32, 0.0  ;;  %v593_v44 = vmul.f32 0.2, %v513_v32  ;;  %v443_v45 = vpop.f32.mrf.mxu0  ;;  %v507_v46 = vpop.f32.mrf.mxu1  ;;  %1037 = vst [vmem:[%s1266_s13 + $0x58] sm:$0xff] %v1005_v39   ;;  %vm543_vm2 = vcmp.gt.f32.partialorder %v441_v36, 0.0 }
 0x103   : > { %1028 = vst [vmem:[%s1266_s13 + $0x10] sm:$0xff] %v960_v40   ;;  %v575_v47 = vmul.f32 0.2, %v441_v36  ;;  %v505_v48 = vadd.f32 %v1251_v24, %v504_v28  ;;  %v452_v49 = vadd.f32 %v1093_v37, %v1251_v24  ;;  %v609_v50 = vsel %vm545_vm0, %v449_v31, %v577_v43 }
 0x104   : > { %1036 = vst [vmem:[%s1266_s13 + $0x50] sm:$0xff] %v1000_v42   ;;  %v516_v51 = vadd.f32 %v1109_v38, %v1251_v24  ;;  %v444_v52 = vadd.f32 %v1251_v24, %v443_v45  ;;  %v1096_v53 = vpop.f32.mrf.mxu0  ;;  %v1112_v54 = vpop.f32.mrf.mxu1  ;;  %v625_v55 = vsel %vm561_vm1, %v513_v32, %v593_v44  ;;  %v508_v63 = vadd.f32 %v1251_v24, %v507_v46 }
 0x105   : > { %v607_v56 = vsel %vm543_vm2, %v441_v36, %v575_v47  ;;  %vm559_vm3 = vcmp.gt.f32.partialorder %v505_v48, 0.0  ;;  %vm546_vm4 = vcmp.gt.f32.partialorder %v452_v49, 0.0  ;;  %v578_v57 = vmul.f32 0.2, %v452_v49 }
 0x106   : > { %vm562_vm5 = vcmp.gt.f32.partialorder %v516_v51, 0.0  ;;  %v594_v58 = vmul.f32 0.2, %v516_v51  ;;  %vm544_vm6 = vcmp.gt.f32.partialorder %v444_v52, 0.0  ;;  %v456_v59 = vpop.f32.mrf.mxu0  ;;  %v520_v60 = vpop.f32.mrf.mxu1  ;;  %v591_v61 = vmul.f32 0.2, %v505_v48 }
 0x107   : > { %v576_v62 = vmul.f32 0.2, %v444_v52  ;;  %v465_v0 = vadd.f32 %v1096_v53, %v1251_v24  ;;  %v610_v1 = vsel %vm546_vm4, %v452_v49, %v578_v57  ;;  %v529_v3 = vadd.f32 %v1112_v54, %v1251_v24 }
 0x108   : > { %v626_v2 = vsel %vm562_vm5, %v516_v51, %v594_v58  ;;  %v457_v4 = vadd.f32 %v1251_v24, %v456_v59  ;;  %v1097_v5 = vpop.f32.mrf.mxu0  ;;  %v1113_v6 = vpop.f32.mrf.mxu1  ;;  %v975_v7 = vpack.c.bf16 %v610_v1, %v609_v50  ;;  %vm560_vm7 = vcmp.gt.f32.partialorder %v508_v63, 0.0 }
 0x109   : > { %v1015_v8 = vpack.c.bf16 %v626_v2, %v625_v55  ;;  %v608_v9 = vsel %vm544_vm6, %v444_v52, %v576_v62  ;;  %v592_v11 = vmul.f32 0.2, %v508_v63  ;;  %v581_v12 = vmul.f32 0.2, %v465_v0 }
 0x10a   : > { %v970_v10 = vpack.c.bf16 %v608_v9, %v607_v56  ;;  %v623_v13 = vsel %vm559_vm3, %v505_v48, %v591_v61  ;;  %1031 = vst [vmem:[%s1266_s13 + $0x28] sm:$0xff] %v975_v7   ;;  %vm549_vm8 = vcmp.gt.f32.partialorder %v465_v0, 0.0  ;;  %v597_v15 = vmul.f32 0.2, %v529_v3  ;;  %v459_v18 = vpop.f32.mrf.mxu0  ;;  %v523_v19 = vpop.f32.mrf.mxu1 }
 0x10b   : > { %1039 = vst [vmem:[%s1266_s13 + $0x68] sm:$0xff] %v1015_v8   ;;  %v624_v14 = vsel %vm560_vm7, %v508_v63, %v592_v11  ;;  %v521_v16 = vadd.f32 %v1251_v24, %v520_v60  ;;  %v468_v17 = vadd.f32 %v1097_v5, %v1251_v24  ;;  %vm565_vm9 = vcmp.gt.f32.partialorder %v529_v3, 0.0 }
 0x10c   : > { %1030 = vst [vmem:[%s1266_s13 + $0x20] sm:$0xff] %v970_v10   ;;  %v1010_v20 = vpack.c.bf16 %v624_v14, %v623_v13  ;;  %vm547_vm10 = vcmp.gt.f32.partialorder %v457_v4, 0.0  ;;  %v532_v21 = vadd.f32 %v1113_v6, %v1251_v24  ;;  %v613_v22 = vsel %vm549_vm8, %v465_v0, %v581_v12 }
 0x10d   : > { %v579_v23 = vmul.f32 0.2, %v457_v4  ;;  %vm550_vm11 = vcmp.gt.f32.partialorder %v468_v17, 0.0  ;;  %v582_v25 = vmul.f32 0.2, %v468_v17  ;;  %v460_v27 = vadd.f32 %v1251_v24, %v459_v18 }
 0x10e   : > { %1038 = vst [vmem:[%s1266_s13 + $0x60] sm:$0xff] %v1010_v20   ;;  %vm566_vm12 = vcmp.gt.f32.partialorder %v532_v21, 0.0  ;;  %v598_v26 = vmul.f32 0.2, %v532_v21  ;;  %v524_v28 = vadd.f32 %v1251_v24, %v523_v19  ;;  %v629_v29 = vsel %vm565_vm9, %v529_v3, %v597_v15 }
 0x10f   : > { %vm563_vm13 = vcmp.gt.f32.partialorder %v521_v16, 0.0  ;;  %v595_v30 = vmul.f32 0.2, %v521_v16  ;;  %v614_v31 = vsel %vm550_vm11, %v468_v17, %v582_v25  ;;  %vm548_vm14 = vcmp.gt.f32.partialorder %v460_v27, 0.0 }
 0x110   : > { %v985_v32 = vpack.c.bf16 %v614_v31, %v613_v22  ;;  %v630_v33 = vsel %vm566_vm12, %v532_v21, %v598_v26  ;;  %v580_v34 = vmul.f32 0.2, %v460_v27  ;;  %vm564_vm15 = vcmp.gt.f32.partialorder %v524_v28, 0.0 }
 0x111   : > { %v1025_v35 = vpack.c.bf16 %v630_v33, %v629_v29  ;;  %v596_v36 = vmul.f32 0.2, %v524_v28  ;;  %v611_v37 = vsel %vm547_vm10, %v457_v4, %v579_v23  ;;  %v627_v39 = vsel %vm563_vm13, %v521_v16, %v595_v30 }
 0x112   : > { %1033 = vst [vmem:[%s1266_s13 + $0x38] sm:$0xff] %v985_v32   ;;  %v612_v38 = vsel %vm548_vm14, %v460_v27, %v580_v34 }
 0x113   : > { %1041 = vst [vmem:[%s1266_s13 + $0x78] sm:$0xff] %v1025_v35   ;;  %v980_v24 = vpack.c.bf16 %v612_v38, %v611_v37  ;;  %v628_v40 = vsel %vm564_vm15, %v524_v28, %v596_v36 }
 0x114   : > { %v1020_v41 = vpack.c.bf16 %v628_v40, %v627_v39 }
 0x115   : > { %1032 = vst [vmem:[%s1266_s13 + $0x30] sm:$0xff] %v980_v24  }
 0x116   : > { %1040 = vst [vmem:[%s1266_s13 + $0x70] sm:$0xff] %v1020_v41  }
 0x117 PF: > { %s13_s12 = sadd.s32 1, %s1168_s12  }
 0x118   : > { %p10_p4 = scmp.ge.s32.totalorder %s13_s12, 4  }
 0x11a   :  { %12 = sbr.rel (!%p10_p4) target bundleno = 1 (0x1), region = 62 }

// kernel: _lambda_.6
= control target key start
LH: loop header
LB: loop body
LE: loop exit
PB: predicated region body
PF: predicated region fallthrough
CT: control target
= control target key end

     0   :  { %s678_s12 = smov 0   ;;  %s740_s0 = inlined_call_operand.vmem [shape: bf16[128,128], index: 0, kind: input, shape index: {}]   ;;  %s741_s1 = inlined_call_operand.vmem [shape: bf16[128,128], index: 1, kind: input, shape index: {}]   ;;  %s742_s2 = inlined_call_operand.vmem [shape: bf16[128,128], index: 2, kind: output, shape index: {0}]   ;;  %s743_s3 = inlined_call_operand.vmem [shape: f32[16,128], index: 3, kind: output, shape index: {1}]  }
   0x1 LB: > { %s684_s13 = sadd.s32 4294967295, %s656_s12   ;;  %p519_p0 = scmp.ge.s32.totalorder %s656_s12, 1  ;;  %s656_s12 = sphi %s678_s12, %s14_s12  }
   0x2   : > { %p141_p1 = scmp.lt.s32.totalorder %s656_s12, 3 }
   0x4   : > { %p142_p2 = pnand %p519_p0, %p141_p1 }
   0x5   : > { %s520_s16 = sshll.u32 (!%p142_p2), %s684_s13, 3  ;;  %p181_p4 = scmp.lt.s32.totalorder (!%p142_p2), %s684_s13, 1 }
   0x6   : > { %145 = sbr.rel (%p142_p2) target bundleno = 274 (0x112), region = 28  ;;  %p170_p3 = scmp.lt.s32.totalorder (!%p142_p2), %s520_s16, 15 }
   0xb   : > { %v638_v0 = vld [vmem:[%s741_s1 + $0x38] sm:$0xff]   ;;  %v639_v1 = vld [vmem:[%s741_s1 + $0x30] sm:$0xff]   ;;  %s745_s16 = smov (!%p170_p3, %s520_s16), 15  ;;  %v640_v2 = vld [vmem:[%s741_s1 + $0x28] sm:$0xff]   ;;  %v421_v49 = vlaneseq  ;;  %s747_s13 = smov (!%p181_p4, %s684_s13), 1 }
   0xc   : > { %590 = vmatprep.subr.bf16.mxu0 %v638_v0  ;;  %614 = vmatprep.subr.bf16.mxu1 %v638_v0  ;;  %s521_s21 = sshll.u32 %s745_s16, 2  ;;  %v641_v3 = vld [vmem:[%s741_s1 + $0x20] sm:$0xff]   ;;  %v642_v6 = vld [vmem:[%s741_s1 + $0x18] sm:$0xff]   ;;  %v643_v7 = vld [vmem:[%s741_s1 + $0x10] sm:$0xff]   ;;  %s524_s11 = sshll.u32 %s747_s13, 3 }
   0xd   : > { %591 = vmatpush3.bf16.msra.mxu0 %v638_v0  ;;  %622 = vmatpush3.bf16.msra.mxu1 %v638_v0  ;;  %s706_s24 = scalar_lea.vmem %s740_s0, %s521_s21  ;;  %v644_v8 = vld [vmem:[%s741_s1 + $0x8] sm:$0xff]   ;;  %v645_v9 = vld [vmem:[%s741_s1] sm:$0xff]   ;;  %s179_s10 = scalar_lea.vmem %s742_s2, %s521_s21  ;;  %v422_v54 = vshrl.u32 %v421_v49, 7 }
   0xe   : > { %592 = vmatprep.subr.bf16.mxu0 %v639_v1  ;;  %615 = vmatprep.subr.bf16.mxu1 %v639_v1  ;;  %v646_v4 = vld [vmem:[%s706_s24] sm:$0xff]   ;;  %v648_v5 = vld [vmem:[%s706_s24 + $0x10] sm:$0xff]   ;;  %v647_v10 = vld [vmem:[%s706_s24 + $0x8] sm:$0xff]   ;;  %s184_s16 = scalar_lea.vmem %s743_s3, %s524_s11 }
   0xf   : > { %606 = vmatprep.mubr.bf16.mxu0 %v646_v4  ;;  %610 = vmatprep.mubr.bf16.mxu1 %v648_v5  ;;  %v649_v11 = vld [vmem:[%s706_s24 + $0x18] sm:$0xff]   ;;  %vm424_vm0 = vcmp.eq.s32.totalorder %v422_v54, 1  ;;  %vm423_vm1 = vcmp.eq.s32.totalorder %v422_v54, 0 }
  0x11   : > { %593 = vmatpush3.bf16.msra.mxu0 %v639_v1  ;;  %623 = vmatpush3.bf16.msra.mxu1 %v639_v1 }
  0x12   : > { %594 = vmatprep.subr.bf16.mxu0 %v640_v2  ;;  %616 = vmatprep.subr.bf16.mxu1 %v640_v2 }
  0x15   : > { %595 = vmatpush3.bf16.msra.mxu0 %v640_v2  ;;  %624 = vmatpush3.bf16.msra.mxu1 %v640_v2 }
  0x16   : > { %596 = vmatprep.subr.bf16.mxu0 %v641_v3  ;;  %617 = vmatprep.subr.bf16.mxu1 %v641_v3 }
  0x19   : > { %597 = vmatpush3.bf16.msra.mxu0 %v641_v3  ;;  %625 = vmatpush3.bf16.msra.mxu1 %v641_v3 }
  0x1a   : > { %598 = vmatprep.subr.bf16.mxu0 %v642_v6  ;;  %618 = vmatprep.subr.bf16.mxu1 %v642_v6 }
  0x1d   : > { %599 = vmatpush3.bf16.msra.mxu0 %v642_v6  ;;  %626 = vmatpush3.bf16.msra.mxu1 %v642_v6 }
  0x1e   : > { %600 = vmatprep.subr.bf16.mxu0 %v643_v7  ;;  %619 = vmatprep.subr.bf16.mxu1 %v643_v7 }
  0x21   : > { %601 = vmatpush3.bf16.msra.mxu0 %v643_v7  ;;  %627 = vmatpush3.bf16.msra.mxu1 %v643_v7 }
  0x22   : > { %602 = vmatprep.subr.bf16.mxu0 %v644_v8  ;;  %620 = vmatprep.subr.bf16.mxu1 %v644_v8 }
  0x25   : > { %603 = vmatpush3.bf16.msra.mxu0 %v644_v8  ;;  %628 = vmatpush3.bf16.msra.mxu1 %v644_v8 }
  0x26   : > { %604 = vmatprep.subr.bf16.mxu0 %v645_v9  ;;  %621 = vmatprep.subr.bf16.mxu1 %v645_v9 }
  0x29   : > { %605 = vmatpush3.bf16.msra.mxu0 %v645_v9  ;;  %629 = vmatpush3.bf16.msra.mxu1 %v645_v9 }
  0x2c   : > { %607 = vmatmul.mubr.bf16.vlgmr.msra.gmra.mxu0 %v647_v10  ;;  %611 = vmatmul.mubr.bf16.vlgmr.msra.gmra.mxu1 %v649_v11 }
  0xec   : > { %v608_v12 = vpop.f32.mrf.mxu0  ;;  %v612_v13 = vpop.f32.mrf.mxu1 }
  0xed   : > { %v402_v27 = vmul.f32 %v608_v12, %v608_v12  ;;  %v406_v39 = vmul.f32 %v612_v13, %v612_v13 }
  0xee   : > { %v316_v14 = vpop.f32.mrf.mxu0  ;;  %v332_v15 = vpop.f32.mrf.mxu1 }
  0xef   : > { %v400_v20 = vmul.f32 %v316_v14, %v316_v14  ;;  %v404_v33 = vmul.f32 %v332_v15, %v332_v15 }
  0xf0   : > { %v609_v16 = vpop.f32.mrf.mxu0  ;;  %v613_v17 = vpop.f32.mrf.mxu1 }
  0xf1   : > { %v563_v18 = vpack.c.bf16 %v609_v16, %v608_v12  ;;  %v573_v19 = vpack.c.bf16 %v613_v17, %v612_v13  ;;  %v403_v30 = vmul.f32 %v609_v16, %v609_v16  ;;  %v407_v42 = vmul.f32 %v613_v17, %v613_v17 }
  0xf2   : > { %v319_v21 = vpop.f32.mrf.mxu0  ;;  %v335_v22 = vpop.f32.mrf.mxu1 }
  0xf3   : > { %575 = vst [vmem:[%s179_s10 + $0x8] sm:$0xff] %v563_v18   ;;  %v558_v23 = vpack.c.bf16 %v319_v21, %v316_v14  ;;  %v387_v24 = vadd.f32 %v319_v21, %v316_v14  ;;  %v401_v25 = vmul.f32 %v319_v21, %v319_v21  ;;  %577 = vst [vmem:[%s179_s10 + $0x18] sm:$0xff] %v573_v19  }
  0xf4   : > { %v568_v26 = vpack.c.bf16 %v335_v22, %v332_v15  ;;  %v405_v37 = vmul.f32 %v335_v22, %v335_v22 }
  0xf5   : > { %559 = vst [vmem:[%s179_s10] sm:$0xff] %v558_v23   ;;  %v388_v28 = vadd.f32 %v608_v12, %v387_v24  ;;  %v408_v29 = vadd.f32 %v401_v25, %v400_v20 }
  0xf6   : > { %576 = vst [vmem:[%s179_s10 + $0x10] sm:$0xff] %v568_v26  }
  0xf7   : > { %v409_v31 = vadd.f32 %v408_v29, %v402_v27  ;;  %v389_v32 = vadd.f32 %v609_v16, %v388_v28 }
  0xf9   : > { %v390_v34 = vadd.f32 %v389_v32, %v332_v15  ;;  %v410_v35 = vadd.f32 %v409_v31, %v403_v30 }
  0xfb   : > { %v391_v36 = vadd.f32 %v390_v34, %v335_v22  ;;  %v411_v38 = vadd.f32 %v410_v35, %v404_v33 }
  0xfd   : > { %v392_v40 = vadd.f32 %v612_v13, %v391_v36  ;;  %v412_v41 = vadd.f32 %v411_v38, %v405_v37 }
  0xff   : > { %v393_v43 = vadd.f32 %v613_v17, %v392_v40  ;;  %v413_v44 = vadd.f32 %v412_v41, %v406_v39 }
 0x101   : > { %v394_v45 = vrot.slane %v393_v43, 4  ;;  %v414_v46 = vadd.f32 %v413_v44, %v407_v42 }
 0x103   : > { %v395_v47 = vadd.f32 %v394_v45, %v393_v43  ;;  %v415_v48 = vrot.slane %v414_v46, 4 }
 0x105   : > { %v396_v50 = vrot.slane %v395_v47, 2  ;;  %v416_v51 = vadd.f32 %v415_v48, %v414_v46 }
 0x107   : > { %v397_v52 = vadd.f32 %v396_v50, %v395_v47  ;;  %v417_v53 = vrot.slane %v416_v51, 2 }
 0x109   : > { %v418_v55 = vadd.f32 %v417_v53, %v416_v51  ;;  %v398_v56 = vrot.slane %v397_v52, 1 }
 0x10b   : > { %v419_v57 = vrot.slane %v418_v55, 1  ;;  %v399_v59 = vadd.f32 %v398_v56, %v397_v52 }
 0x10d   : > { %v420_v58 = vadd.f32 %v419_v57, %v418_v55 }
 0x10f   : > { %v425_v60 = vsel %vm424_vm0, %v420_v58, 0.0 }
 0x110   : > { %v426_v61 = vsel %vm423_vm1, %v399_v59, %v425_v60 }
 0x111   : > { %427 = vst [vmem:[%s184_s16] sm:$0xff] %v426_v61 }
 0x112 PF: > { %s14_s12 = sadd.s32 1, %s656_s12  }
 0x113   : > { %p11_p5 = scmp.ge.s32.totalorder %s14_s12, 4  }
 0x115   :  { %13 = sbr.rel (!%p11_p5) target bundleno = 1 (0x1), region = 70 }

// kernel: _lambda_.7
= control target key start
LH: loop header
LB: loop body
LE: loop exit
PB: predicated region body
PF: predicated region fallthrough
CT: control target
= control target key end

     0   :  { %s608_s12 = smov 0   ;;  %s685_s0 = inlined_call_operand.vmem [shape: bf16[32,256], index: 0, kind: input, shape index: {}]   ;;  %s686_s1 = inlined_call_operand.vmem [shape: bf16[256,128], index: 1, kind: input, shape index: {}]   ;;  %s687_s2 = inlined_call_operand.vmem [shape: bf16[32,128], index: 2, kind: output, shape index: {0}]   ;;  %s688_s3 = inlined_call_operand.vmem [shape: f32[16,128], index: 3, kind: output, shape index: {1}]  }
   0x1 LB: > { %s614_s13 = sadd.s32 4294967295, %s586_s12   ;;  %p494_p0 = scmp.ge.s32.totalorder %s586_s12, 1  ;;  %s586_s12 = sphi %s608_s12, %s14_s12  }
   0x2   : > { %p142_p1 = scmp.lt.s32.totalorder %s586_s12, 3 }
   0x4   : > { %p143_p2 = pnand %p494_p0, %p142_p1 }
   0x5   : > { %s495_s16 = sshll.u32 (!%p143_p2), %s614_s13, 1  ;;  %p184_p4 = scmp.lt.s32.totalorder (!%p143_p2), %s614_s13, 1 }
   0x6   : > { %146 = sbr.rel (%p143_p2) target bundleno = 264 (0x108), region = 28  ;;  %p172_p3 = scmp.lt.s32.totalorder (!%p143_p2), %s495_s16, 3 }
   0xb   : > { %v561_v0 = vld [vmem:[%s686_s1 + $0x78] sm:$0xff]   ;;  %v563_v2 = vld [vmem:[%s686_s1 + $0x70] sm:$0xff]   ;;  %v565_v4 = vld [vmem:[%s686_s1 + $0x68] sm:$0xff]   ;;  %s690_s16 = smov (!%p172_p3, %s495_s16), 3  ;;  %v396_v32 = vlaneseq  ;;  %s692_s13 = smov (!%p184_p4, %s614_s13), 1 }
   0xc   : > { %v562_v1 = vld [vmem:[%s686_s1 + $0x38] sm:$0xff]   ;;  %531 = vmatprep.subr.bf16.mxu0 %v561_v0  ;;  %v564_v3 = vld [vmem:[%s686_s1 + $0x30] sm:$0xff]   ;;  %v566_v5 = vld [vmem:[%s686_s1 + $0x28] sm:$0xff]   ;;  %s523_s4 = sshll.u32 %s690_s16, 3  ;;  %s499_s27 = sshll.u32 %s690_s16, 2 }
   0xd   : > { %532 = vmatpush3.bf16.msra.mxu0 %v562_v1  ;;  %v567_v6 = vld [vmem:[%s686_s1 + $0x60] sm:$0xff]   ;;  %v569_v8 = vld [vmem:[%s686_s1 + $0x58] sm:$0xff]   ;;  %s176_s9 = scalar_lea.vmem %s685_s0, %s523_s4  ;;  %v571_v10 = vld [vmem:[%s686_s1 + $0x50] sm:$0xff]   ;;  %s182_s30 = scalar_lea.vmem %s687_s2, %s499_s27  ;;  %v397_v37 = vshrl.u32 %v396_v32, 7 }
   0xe   : > { %533 = vmatprep.subr.bf16.mxu0 %v563_v2  ;;  %v568_v7 = vld [vmem:[%s686_s1 + $0x20] sm:$0xff]   ;;  %v570_v9 = vld [vmem:[%s686_s1 + $0x18] sm:$0xff]   ;;  %v572_v12 = vld [vmem:[%s686_s1 + $0x10] sm:$0xff]   ;;  %s500_s16 = sshll.u32 %s692_s13, 3 }
   0xf   : > { %v579_v11 = vld [vmem:[%s176_s9 + $0x4] ss:$8 sps:$4 sm:$0xff]   ;;  %v577_v17 = vld [vmem:[%s176_s9] ss:$8 sps:$4 sm:$0xff]   ;;  %vm399_vm0 = vcmp.eq.s32.totalorder %v397_v37, 1  ;;  %vm398_vm1 = vcmp.eq.s32.totalorder %v397_v37, 0  ;;  %s187_s6 = scalar_lea.vmem %s688_s3, %s500_s16 }
  0x10   : > { %361 = vmatprep.mubr.bf16.mxu0 %v579_v11  ;;  %v573_v13 = vld [vmem:[%s686_s1 + $0x48] sm:$0xff]   ;;  %v575_v15 = vld [vmem:[%s686_s1 + $0x40] sm:$0xff]  }
  0x11   : > { %534 = vmatpush3.bf16.msra.mxu0 %v564_v3  ;;  %v574_v14 = vld [vmem:[%s686_s1 + $0x8] sm:$0xff]   ;;  %v576_v16 = vld [vmem:[%s686_s1] sm:$0xff]  }
  0x12   : > { %535 = vmatprep.subr.bf16.mxu0 %v565_v4 }
  0x15   : > { %536 = vmatpush3.bf16.msra.mxu0 %v566_v5 }
  0x16   : > { %537 = vmatprep.subr.bf16.mxu0 %v567_v6 }
  0x19   : > { %538 = vmatpush3.bf16.msra.mxu0 %v568_v7 }
  0x1a   : > { %539 = vmatprep.subr.bf16.mxu0 %v569_v8 }
  0x1d   : > { %540 = vmatpush3.bf16.msra.mxu0 %v570_v9 }
  0x1e   : > { %541 = vmatprep.subr.bf16.mxu0 %v571_v10 }
  0x21   : > { %542 = vmatpush3.bf16.msra.mxu0 %v572_v12 }
  0x22   : > { %543 = vmatprep.subr.bf16.mxu0 %v573_v13 }
  0x25   : > { %544 = vmatpush3.bf16.msra.mxu0 %v574_v14 }
  0x26   : > { %545 = vmatprep.subr.bf16.mxu0 %v575_v15 }
  0x29   : > { %546 = vmatpush3.bf16.msra.mxu0 %v576_v16 }
  0x2c   : > { %362 = vmatmul.mubr.bf16.vlgmr.msra.gmra.mxu0 %v577_v17 }
  0xec   : > { %v547_v18 = vpop.f32.mrf.mxu0 }
  0xee   : > { %v548_v19 = vpop.f32.mrf.mxu0 }
  0xef   : > { %v549_v21 = vadd.f32 %v548_v19, %v547_v18 }
  0xf0   : > { %v550_v20 = vpop.f32.mrf.mxu0 }
  0xf1   : > { %v387_v24 = vmul.f32 %v549_v21, %v549_v21 }
  0xf2   : > { %v551_v22 = vpop.f32.mrf.mxu0 }
  0xf3   : > { %v552_v23 = vadd.f32 %v551_v22, %v550_v20 }
  0xf5   : > { %v529_v25 = vpack.c.bf16 %v552_v23, %v549_v21  ;;  %v380_v26 = vadd.f32 %v552_v23, %v549_v21  ;;  %v388_v27 = vmul.f32 %v552_v23, %v552_v23 }
  0xf7   : > { %530 = vst [vmem:[%s182_s30] sm:$0xff] %v529_v25   ;;  %v381_v28 = vrot.slane %v380_v26, 4  ;;  %v389_v29 = vadd.f32 %v388_v27, %v387_v24 }
  0xf9   : > { %v382_v30 = vadd.f32 %v381_v28, %v380_v26  ;;  %v390_v31 = vrot.slane %v389_v29, 4 }
  0xfb   : > { %v383_v33 = vrot.slane %v382_v30, 2  ;;  %v391_v34 = vadd.f32 %v390_v31, %v389_v29 }
  0xfd   : > { %v384_v35 = vadd.f32 %v383_v33, %v382_v30  ;;  %v392_v36 = vrot.slane %v391_v34, 2 }
  0xff   : > { %v393_v38 = vadd.f32 %v392_v36, %v391_v34  ;;  %v385_v39 = vrot.slane %v384_v35, 1 }
 0x101   : > { %v394_v40 = vrot.slane %v393_v38, 1  ;;  %v386_v42 = vadd.f32 %v385_v39, %v384_v35 }
 0x103   : > { %v395_v41 = vadd.f32 %v394_v40, %v393_v38 }
 0x105   : > { %v400_v43 = vsel %vm399_vm0, %v395_v41, 0.0 }
 0x106   : > { %v401_v44 = vsel %vm398_vm1, %v386_v42, %v400_v43 }
 0x107   : > { %402 = vst [vmem:[%s187_s6] sm:$0xff] %v401_v44 }
 0x108 PF: > { %s14_s12 = sadd.s32 1, %s586_s12  }
 0x109   : > { %p11_p5 = scmp.ge.s32.totalorder %s14_s12, 4  }
 0x10b   :  { %13 = sbr.rel (!%p11_p5) target bundleno = 1 (0x1), region = 70 }

// kernel: _lambda_.8
= control target key start
LH: loop header
LB: loop body
LE: loop exit
PB: predicated region body
PF: predicated region fallthrough
CT: control target
= control target key end

     0   :  { %s848_s12 = smov 0   ;;  %s973_s0 = inlined_call_operand.vmem [shape: bf16[32,512], index: 0, kind: input, shape index: {}]   ;;  %s974_s1 = inlined_call_operand.vmem [shape: bf16[512,128], index: 1, kind: input, shape index: {}]   ;;  %s975_s2 = inlined_call_operand.vmem [shape: bf16[32,128], index: 2, kind: output, shape index: {0}]   ;;  %s976_s3 = inlined_call_operand.vmem [shape: f32[16,128], index: 3, kind: output, shape index: {1}]  }
   0x1 LB: > { %s854_s13 = sadd.s32 4294967295, %s826_s12   ;;  %p675_p0 = scmp.ge.s32.totalorder %s826_s12, 1  ;;  %s826_s12 = sphi %s848_s12, %s14_s12  }
   0x2   : > { %p142_p1 = scmp.lt.s32.totalorder %s826_s12, 3 }
   0x4   : > { %p143_p2 = pnand %p675_p0, %p142_p1 }
   0x5   : > { %s676_s21 = sshll.u32 (!%p143_p2), %s854_s13, 1  ;;  %p184_p4 = scmp.lt.s32.totalorder (!%p143_p2), %s854_s13, 1 }
   0x6   : > { %146 = sbr.rel (%p143_p2) target bundleno = 268 (0x10c), region = 28  ;;  %p172_p3 = scmp.lt.s32.totalorder (!%p143_p2), %s676_s21, 3 }
   0xb   : > { %v782_v0 = vld [vmem:[%s974_s1 + $0x78] sm:$0xff]   ;;  %v786_v4 = vld [vmem:[%s974_s1 + $0x70] sm:$0xff]   ;;  %v790_v8 = vld [vmem:[%s974_s1 + $0x68] sm:$0xff]   ;;  %s978_s21 = smov (!%p172_p3, %s676_s21), 3  ;;  %v577_v58 = vlaneseq  ;;  %s980_s13 = smov (!%p184_p4, %s854_s13), 1 }
   0xc   : > { %v783_v1 = vld [vmem:[%s974_s1 + $0xf8] sm:$0xff]   ;;  %730 = vmatprep.subr.bf16.mxu0 %v782_v0  ;;  %v787_v5 = vld [vmem:[%s974_s1 + $0xf0] sm:$0xff]   ;;  %v791_v9 = vld [vmem:[%s974_s1 + $0xe8] sm:$0xff]   ;;  %s722_s19 = sshll.u32 %s978_s21, 4  ;;  %s680_s7 = sshll.u32 %s978_s21, 2 }
   0xd   : > { %v784_v2 = vld [vmem:[%s974_s1 + $0x38] sm:$0xff]   ;;  %752 = vmatprep.subr.bf16.mxu1 %v783_v1  ;;  %v788_v6 = vld [vmem:[%s974_s1 + $0x30] sm:$0xff]   ;;  %v792_v10 = vld [vmem:[%s974_s1 + $0x28] sm:$0xff]   ;;  %s176_s29 = scalar_lea.vmem %s973_s0, %s722_s19  ;;  %s182_s10 = scalar_lea.vmem %s975_s2, %s680_s7  ;;  %v578_v63 = vshrl.u32 %v577_v58, 7 }
   0xe   : > { %v785_v3 = vld [vmem:[%s974_s1 + $0xb8] sm:$0xff]   ;;  %731 = vmatpush3.bf16.msra.mxu0 %v784_v2  ;;  %v789_v7 = vld [vmem:[%s974_s1 + $0xb0] sm:$0xff]   ;;  %v793_v11 = vld [vmem:[%s974_s1 + $0xa8] sm:$0xff]   ;;  %s681_s21 = sshll.u32 %s980_s13, 3 }
   0xf   : > { %753 = vmatpush3.bf16.msra.mxu1 %v785_v3  ;;  %732 = vmatprep.subr.bf16.mxu0 %v786_v4  ;;  %v794_v12 = vld [vmem:[%s974_s1 + $0x60] sm:$0xff]   ;;  %v798_v16 = vld [vmem:[%s974_s1 + $0x58] sm:$0xff]   ;;  %v802_v20 = vld [vmem:[%s974_s1 + $0x50] sm:$0xff]   ;;  %vm580_vm0 = vcmp.eq.s32.totalorder %v578_v63, 1  ;;  %vm579_vm1 = vcmp.eq.s32.totalorder %v578_v63, 0  ;;  %s187_s15 = scalar_lea.vmem %s976_s3, %s681_s21 }
  0x10   : > { %754 = vmatprep.subr.bf16.mxu1 %v787_v5  ;;  %v795_v13 = vld [vmem:[%s974_s1 + $0xe0] sm:$0xff]   ;;  %v799_v17 = vld [vmem:[%s974_s1 + $0xd8] sm:$0xff]   ;;  %v803_v21 = vld [vmem:[%s974_s1 + $0xd0] sm:$0xff]  }
  0x11   : > { %v796_v14 = vld [vmem:[%s974_s1 + $0x20] sm:$0xff]   ;;  %v800_v18 = vld [vmem:[%s974_s1 + $0x18] sm:$0xff]   ;;  %v804_v22 = vld [vmem:[%s974_s1 + $0x10] sm:$0xff]  }
  0x12   : > { %733 = vmatpush3.bf16.msra.mxu0 %v788_v6  ;;  %v797_v15 = vld [vmem:[%s974_s1 + $0xa0] sm:$0xff]   ;;  %v801_v19 = vld [vmem:[%s974_s1 + $0x98] sm:$0xff]   ;;  %v805_v23 = vld [vmem:[%s974_s1 + $0x90] sm:$0xff]  }
  0x13   : > { %755 = vmatpush3.bf16.msra.mxu1 %v789_v7  ;;  %734 = vmatprep.subr.bf16.mxu0 %v790_v8  ;;  %v806_v24 = vld [vmem:[%s974_s1 + $0x48] sm:$0xff]   ;;  %v810_v28 = vld [vmem:[%s974_s1 + $0x40] sm:$0xff]  }
  0x14   : > { %756 = vmatprep.subr.bf16.mxu1 %v791_v9  ;;  %v807_v25 = vld [vmem:[%s974_s1 + $0xc8] sm:$0xff]   ;;  %v811_v29 = vld [vmem:[%s974_s1 + $0xc0] sm:$0xff]  }
  0x15   : > { %v808_v26 = vld [vmem:[%s974_s1 + $0x8] sm:$0xff]   ;;  %v812_v30 = vld [vmem:[%s974_s1] sm:$0xff]  }
  0x16   : > { %735 = vmatpush3.bf16.msra.mxu0 %v792_v10  ;;  %v809_v27 = vld [vmem:[%s974_s1 + $0x88] sm:$0xff]   ;;  %v813_v31 = vld [vmem:[%s974_s1 + $0x80] sm:$0xff]  }
  0x17   : > { %757 = vmatpush3.bf16.msra.mxu1 %v793_v11  ;;  %736 = vmatprep.subr.bf16.mxu0 %v794_v12  ;;  %v814_v32 = vld [vmem:[%s176_s29] ss:$16 sps:$4 sm:$0xff]   ;;  %v816_v33 = vld [vmem:[%s176_s29 + $0x4] ss:$16 sps:$4 sm:$0xff]   ;;  %v817_v34 = vld [vmem:[%s176_s29 + $0x8] ss:$16 sps:$4 sm:$0xff]  }
  0x18   : > { %758 = vmatprep.subr.bf16.mxu1 %v795_v13  ;;  %v819_v35 = vld [vmem:[%s176_s29 + $0xc] ss:$16 sps:$4 sm:$0xff]   ;;  %501 = vmatprep.mubr.bf16.mxu0 %v816_v33 }
  0x19   : > { %542 = vmatprep.mubr.bf16.mxu1 %v819_v35 }
  0x1a   : > { %737 = vmatpush3.bf16.msra.mxu0 %v796_v14 }
  0x1b   : > { %759 = vmatpush3.bf16.msra.mxu1 %v797_v15  ;;  %738 = vmatprep.subr.bf16.mxu0 %v798_v16 }
  0x1c   : > { %760 = vmatprep.subr.bf16.mxu1 %v799_v17 }
  0x1e   : > { %739 = vmatpush3.bf16.msra.mxu0 %v800_v18 }
  0x1f   : > { %761 = vmatpush3.bf16.msra.mxu1 %v801_v19  ;;  %740 = vmatprep.subr.bf16.mxu0 %v802_v20 }
  0x20   : > { %762 = vmatprep.subr.bf16.mxu1 %v803_v21 }
  0x22   : > { %741 = vmatpush3.bf16.msra.mxu0 %v804_v22 }
  0x23   : > { %763 = vmatpush3.bf16.msra.mxu1 %v805_v23  ;;  %742 = vmatprep.subr.bf16.mxu0 %v806_v24 }
  0x24   : > { %764 = vmatprep.subr.bf16.mxu1 %v807_v25 }
  0x26   : > { %743 = vmatpush3.bf16.msra.mxu0 %v808_v26 }
  0x27   : > { %765 = vmatpush3.bf16.msra.mxu1 %v809_v27  ;;  %744 = vmatprep.subr.bf16.mxu0 %v810_v28 }
  0x28   : > { %766 = vmatprep.subr.bf16.mxu1 %v811_v29 }
  0x2a   : > { %745 = vmatpush3.bf16.msra.mxu0 %v812_v30 }
  0x2b   : > { %767 = vmatpush3.bf16.msra.mxu1 %v813_v31 }
  0x2d   : > { %502 = vmatmul.mubr.bf16.vlgmr.msra.gmra.mxu0 %v814_v32 }
  0x2e   : > { %543 = vmatmul.mubr.bf16.vlgmr.msra.gmra.mxu1 %v817_v34 }
  0xed   : > { %v746_v36 = vpop.f32.mrf.mxu0 }
  0xee   : > { %v768_v37 = vpop.f32.mrf.mxu1 }
  0xef   : > { %v747_v38 = vpop.f32.mrf.mxu0 }
  0xf0   : > { %v769_v39 = vpop.f32.mrf.mxu1  ;;  %v748_v40 = vadd.f32 %v747_v38, %v746_v36 }
  0xf1   : > { %v770_v41 = vadd.f32 %v769_v39, %v768_v37  ;;  %v749_v42 = vpop.f32.mrf.mxu0 }
  0xf2   : > { %v771_v43 = vpop.f32.mrf.mxu1 }
  0xf3   : > { %v750_v44 = vpop.f32.mrf.mxu0  ;;  %v545_v47 = vadd.f32 %v770_v41, %v748_v40 }
  0xf4   : > { %v751_v45 = vadd.f32 %v750_v44, %v749_v42  ;;  %v772_v46 = vpop.f32.mrf.mxu1 }
  0xf5   : > { %v773_v48 = vadd.f32 %v772_v46, %v771_v43  ;;  %v568_v50 = vmul.f32 %v545_v47, %v545_v47 }
  0xf7   : > { %v548_v49 = vadd.f32 %v773_v48, %v751_v45 }
  0xf9   : > { %v728_v51 = vpack.c.bf16 %v548_v49, %v545_v47  ;;  %v561_v52 = vadd.f32 %v548_v49, %v545_v47  ;;  %v569_v53 = vmul.f32 %v548_v49, %v548_v49 }
  0xfb   : > { %729 = vst [vmem:[%s182_s10] sm:$0xff] %v728_v51   ;;  %v562_v54 = vrot.slane %v561_v52, 4  ;;  %v570_v55 = vadd.f32 %v569_v53, %v568_v50 }
  0xfd   : > { %v563_v56 = vadd.f32 %v562_v54, %v561_v52  ;;  %v571_v57 = vrot.slane %v570_v55, 4 }
  0xff   : > { %v564_v59 = vrot.slane %v563_v56, 2  ;;  %v572_v60 = vadd.f32 %v571_v57, %v570_v55 }
 0x101   : > { %v565_v61 = vadd.f32 %v564_v59, %v563_v56  ;;  %v573_v62 = vrot.slane %v572_v60, 2 }
 0x103   : > { %v574_v0 = vadd.f32 %v573_v62, %v572_v60  ;;  %v566_v1 = vrot.slane %v565_v61, 1 }
 0x105   : > { %v575_v2 = vrot.slane %v574_v0, 1  ;;  %v567_v4 = vadd.f32 %v566_v1, %v565_v61 }
 0x107   : > { %v576_v3 = vadd.f32 %v575_v2, %v574_v0 }
 0x109   : > { %v581_v5 = vsel %vm580_vm0, %v576_v3, 0.0 }
 0x10a   : > { %v582_v6 = vsel %vm579_vm1, %v567_v4, %v581_v5 }
 0x10b   : > { %583 = vst [vmem:[%s187_s15] sm:$0xff] %v582_v6 }
 0x10c PF: > { %s14_s12 = sadd.s32 1, %s826_s12  }
 0x10d   : > { %p11_p5 = scmp.ge.s32.totalorder %s14_s12, 4  }
 0x10f   :  { %13 = sbr.rel (!%p11_p5) target bundleno = 1 (0x1), region = 70 }

// kernel: _lambda_.9
= control target key start
LH: loop header
LB: loop body
LE: loop exit
PB: predicated region body
PF: predicated region fallthrough
CT: control target
= control target key end

     0   :  { %s1195_s1 = inlined_call_operand.vmem [shape: bf16[1024,128], index: 1, kind: input, shape index: {}]   ;;  %s1196_s0 = inlined_call_operand.vmem [shape: bf16[8,1024], index: 0, kind: input, shape index: {}]   ;;  %s1197_s2 = inlined_call_operand.vmem [shape: f32[1,128], index: 2, kind: input, shape index: {}]   ;;  %s1198_s3 = inlined_call_operand.vmem [shape: bf16[8,128], index: 3, kind: output, shape index: {}]  }
   0x1   :  { %v893_v0 = vld [vmem:[%s1195_s1 + $0x78] sm:$0xff]   ;;  %v897_v4 = vld [vmem:[%s1195_s1 + $0x70] sm:$0xff]   ;;  %v901_v8 = vld [vmem:[%s1195_s1 + $0x68] sm:$0xff]  }
   0x2   :  { %v894_v1 = vld [vmem:[%s1195_s1 + $0xf8] sm:$0xff]   ;;  %805 = vmatprep.subr.bf16.mxu0 %v893_v0  ;;  %v898_v5 = vld [vmem:[%s1195_s1 + $0xf0] sm:$0xff]   ;;  %v902_v9 = vld [vmem:[%s1195_s1 + $0xe8] sm:$0xff]  }
   0x3   :  { %v895_v2 = vld [vmem:[%s1195_s1 + $0x38] sm:$0xff]   ;;  %827 = vmatprep.subr.bf16.mxu1 %v894_v1  ;;  %v899_v6 = vld [vmem:[%s1195_s1 + $0x30] sm:$0xff]   ;;  %v903_v10 = vld [vmem:[%s1195_s1 + $0x28] sm:$0xff]  }
   0x4   :  { %v896_v3 = vld [vmem:[%s1195_s1 + $0xb8] sm:$0xff]   ;;  %806 = vmatpush3.bf16.msra.mxu0 %v895_v2  ;;  %v900_v7 = vld [vmem:[%s1195_s1 + $0xb0] sm:$0xff]   ;;  %v904_v11 = vld [vmem:[%s1195_s1 + $0xa8] sm:$0xff]  }
   0x5   :  { %828 = vmatpush3.bf16.msra.mxu1 %v896_v3  ;;  %807 = vmatprep.subr.bf16.mxu0 %v897_v4  ;;  %v905_v12 = vld [vmem:[%s1195_s1 + $0x60] sm:$0xff]   ;;  %v909_v16 = vld [vmem:[%s1195_s1 + $0x58] sm:$0xff]   ;;  %v913_v20 = vld [vmem:[%s1195_s1 + $0x50] sm:$0xff]  }
   0x6   :  { %829 = vmatprep.subr.bf16.mxu1 %v898_v5  ;;  %v906_v13 = vld [vmem:[%s1195_s1 + $0xe0] sm:$0xff]   ;;  %v910_v17 = vld [vmem:[%s1195_s1 + $0xd8] sm:$0xff]   ;;  %v914_v21 = vld [vmem:[%s1195_s1 + $0xd0] sm:$0xff]  }
   0x7   :  { %v907_v14 = vld [vmem:[%s1195_s1 + $0x20] sm:$0xff]   ;;  %v911_v18 = vld [vmem:[%s1195_s1 + $0x18] sm:$0xff]   ;;  %v915_v22 = vld [vmem:[%s1195_s1 + $0x10] sm:$0xff]  }
   0x8   :  { %808 = vmatpush3.bf16.msra.mxu0 %v899_v6  ;;  %v908_v15 = vld [vmem:[%s1195_s1 + $0xa0] sm:$0xff]   ;;  %v912_v19 = vld [vmem:[%s1195_s1 + $0x98] sm:$0xff]   ;;  %v916_v23 = vld [vmem:[%s1195_s1 + $0x90] sm:$0xff]  }
   0x9   :  { %830 = vmatpush3.bf16.msra.mxu1 %v900_v7  ;;  %809 = vmatprep.subr.bf16.mxu0 %v901_v8  ;;  %v917_v24 = vld [vmem:[%s1195_s1 + $0x48] sm:$0xff]   ;;  %v921_v28 = vld [vmem:[%s1195_s1 + $0x40] sm:$0xff]   ;;  %v929_v38 = vld [vmem:[%s1195_s1 + $0x178] sm:$0xff]  }
   0xa   :  { %831 = vmatprep.subr.bf16.mxu1 %v902_v9  ;;  %v918_v25 = vld [vmem:[%s1195_s1 + $0xc8] sm:$0xff]   ;;  %v922_v29 = vld [vmem:[%s1195_s1 + $0xc0] sm:$0xff]   ;;  %v930_v39 = vld [vmem:[%s1195_s1 + $0x1f8] sm:$0xff]  }
   0xb   :  { %v919_v26 = vld [vmem:[%s1195_s1 + $0x8] sm:$0xff]   ;;  %v923_v30 = vld [vmem:[%s1195_s1] sm:$0xff]   ;;  %v931_v40 = vld [vmem:[%s1195_s1 + $0x138] sm:$0xff]  }
   0xc   :  { %810 = vmatpush3.bf16.msra.mxu0 %v903_v10  ;;  %v920_v27 = vld [vmem:[%s1195_s1 + $0x88] sm:$0xff]   ;;  %v924_v31 = vld [vmem:[%s1195_s1 + $0x80] sm:$0xff]   ;;  %v932_v41 = vld [vmem:[%s1195_s1 + $0x1b8] sm:$0xff]  }
   0xd   :  { %832 = vmatpush3.bf16.msra.mxu1 %v904_v11  ;;  %811 = vmatprep.subr.bf16.mxu0 %v905_v12  ;;  %v15_v32 = vld [vmem:[%s1196_s0] sm:$0xff]  ;;  %v16_v33 = vld [vmem:[%s1196_s0 + $0x8] sm:$0xff]  ;;  %v933_v42 = vld [vmem:[%s1195_s1 + $0x170] sm:$0xff]  }
   0xe   :  { %833 = vmatprep.subr.bf16.mxu1 %v906_v13  ;;  %v733_v34 = vcombine.low %v15_v32, %v15_v32  ;;  %v734_v35 = vcombine.high %v15_v32, %v15_v32  ;;  %v735_v36 = vcombine.low %v16_v33, %v16_v33  ;;  %v736_v37 = vcombine.high %v16_v33, %v16_v33  ;;  %v934_v43 = vld [vmem:[%s1195_s1 + $0x1f0] sm:$0xff]   ;;  %v937_v46 = vld [vmem:[%s1195_s1 + $0x168] sm:$0xff]   ;;  %v941_v50 = vld [vmem:[%s1195_s1 + $0x160] sm:$0xff]  }
   0xf   :  { %v935_v44 = vld [vmem:[%s1195_s1 + $0x130] sm:$0xff]   ;;  %v938_v47 = vld [vmem:[%s1195_s1 + $0x1e8] sm:$0xff]   ;;  %v942_v51 = vld [vmem:[%s1195_s1 + $0x1e0] sm:$0xff]  }
  0x10   :  { %812 = vmatpush3.bf16.msra.mxu0 %v907_v14  ;;  %598 = vmatprep.mubr.bf16.mxu0 %v734_v35  ;;  %v936_v45 = vld [vmem:[%s1195_s1 + $0x1b0] sm:$0xff]   ;;  %v939_v48 = vld [vmem:[%s1195_s1 + $0x128] sm:$0xff]   ;;  %v943_v52 = vld [vmem:[%s1195_s1 + $0x120] sm:$0xff]  }
  0x11   :  { %834 = vmatpush3.bf16.msra.mxu1 %v908_v15  ;;  %813 = vmatprep.subr.bf16.mxu0 %v909_v16  ;;  %v940_v49 = vld [vmem:[%s1195_s1 + $0x1a8] sm:$0xff]   ;;  %v944_v53 = vld [vmem:[%s1195_s1 + $0x1a0] sm:$0xff]   ;;  %v945_v54 = vld [vmem:[%s1195_s1 + $0x158] sm:$0xff]  }
  0x12   :  { %835 = vmatprep.subr.bf16.mxu1 %v910_v17  ;;  %638 = vmatprep.mubr.bf16.mxu1 %v736_v37  ;;  %v946_v55 = vld [vmem:[%s1195_s1 + $0x1d8] sm:$0xff]   ;;  %v949_v58 = vld [vmem:[%s1195_s1 + $0x150] sm:$0xff]   ;;  %v953_v62 = vld [vmem:[%s1195_s1 + $0x148] sm:$0xff]  }
  0x13   :  { %v947_v56 = vld [vmem:[%s1195_s1 + $0x118] sm:$0xff]   ;;  %v950_v59 = vld [vmem:[%s1195_s1 + $0x1d0] sm:$0xff]   ;;  %v954_v63 = vld [vmem:[%s1195_s1 + $0x1c8] sm:$0xff]  }
  0x14   :  { %814 = vmatpush3.bf16.msra.mxu0 %v911_v18  ;;  %v948_v57 = vld [vmem:[%s1195_s1 + $0x198] sm:$0xff]   ;;  %v951_v60 = vld [vmem:[%s1195_s1 + $0x110] sm:$0xff]   ;;  %v955_v0 = vld [vmem:[%s1195_s1 + $0x108] sm:$0xff]  }
  0x15   :  { %836 = vmatpush3.bf16.msra.mxu1 %v912_v19  ;;  %815 = vmatprep.subr.bf16.mxu0 %v913_v20  ;;  %v952_v61 = vld [vmem:[%s1195_s1 + $0x190] sm:$0xff]   ;;  %v956_v1 = vld [vmem:[%s1195_s1 + $0x188] sm:$0xff]   ;;  %v957_v2 = vld [vmem:[%s1195_s1 + $0x140] sm:$0xff]  }
  0x16   :  { %837 = vmatprep.subr.bf16.mxu1 %v914_v21  ;;  %v958_v3 = vld [vmem:[%s1195_s1 + $0x1c0] sm:$0xff]   ;;  %v17_v6 = vld [vmem:[%s1196_s0 + $0x10] sm:$0xff]  ;;  %v18_v9 = vld [vmem:[%s1196_s0 + $0x18] sm:$0xff] }
  0x17   :  { %v959_v4 = vld [vmem:[%s1195_s1 + $0x100] sm:$0xff]   ;;  %v737_v7 = vcombine.low %v17_v6, %v17_v6  ;;  %v738_v8 = vcombine.high %v17_v6, %v17_v6  ;;  %v739_v10 = vcombine.low %v18_v9, %v18_v9  ;;  %v740_v11 = vcombine.high %v18_v9, %v18_v9 }
  0x18   :  { %816 = vmatpush3.bf16.msra.mxu0 %v915_v22  ;;  %v960_v5 = vld [vmem:[%s1195_s1 + $0x180] sm:$0xff]  }
  0x19   :  { %838 = vmatpush3.bf16.msra.mxu1 %v916_v23  ;;  %817 = vmatprep.subr.bf16.mxu0 %v917_v24  ;;  %v732_v21 = vld [vmem:[%s1197_s2] ss:$0 sm:$0xff] }
  0x1a   :  { %839 = vmatprep.subr.bf16.mxu1 %v918_v25 }
  0x1c   :  { %818 = vmatpush3.bf16.msra.mxu0 %v919_v26 }
  0x1d   :  { %840 = vmatpush3.bf16.msra.mxu1 %v920_v27  ;;  %819 = vmatprep.subr.bf16.mxu0 %v921_v28 }
  0x1e   :  { %841 = vmatprep.subr.bf16.mxu1 %v922_v29 }
  0x20   :  { %820 = vmatpush3.bf16.msra.mxu0 %v923_v30 }
  0x21   :  { %842 = vmatpush3.bf16.msra.mxu1 %v924_v31  ;;  %849 = vmatprep.subr.bf16.mxu0 %v929_v38 }
  0x22   :  { %871 = vmatprep.subr.bf16.mxu1 %v930_v39 }
  0x23   :  { %599 = vmatmul.mubr.bf16.vlgmr.msra.gmra.mxu0 %v733_v34 }
  0x24   :  { %639 = vmatmul.mubr.bf16.vlgmr.msra.gmra.mxu1 %v735_v36  ;;  %850 = vmatpush3.bf16.msra.mxu0 %v931_v40 }
  0x25   :  { %872 = vmatpush3.bf16.msra.mxu1 %v932_v41  ;;  %851 = vmatprep.subr.bf16.mxu0 %v933_v42 }
  0x26   :  { %873 = vmatprep.subr.bf16.mxu1 %v934_v43  ;;  %678 = vmatprep.mubr.bf16.mxu0 %v738_v8 }
  0x27   :  { %718 = vmatprep.mubr.bf16.mxu1 %v740_v11 }
  0x28   :  { %852 = vmatpush3.bf16.msra.mxu0 %v935_v44 }
  0x29   :  { %874 = vmatpush3.bf16.msra.mxu1 %v936_v45  ;;  %853 = vmatprep.subr.bf16.mxu0 %v937_v46 }
  0x2a   :  { %875 = vmatprep.subr.bf16.mxu1 %v938_v47 }
  0x2c   :  { %854 = vmatpush3.bf16.msra.mxu0 %v939_v48 }
  0x2d   :  { %876 = vmatpush3.bf16.msra.mxu1 %v940_v49  ;;  %855 = vmatprep.subr.bf16.mxu0 %v941_v50 }
  0x2e   :  { %877 = vmatprep.subr.bf16.mxu1 %v942_v51 }
  0x30   :  { %856 = vmatpush3.bf16.msra.mxu0 %v943_v52 }
  0x31   :  { %878 = vmatpush3.bf16.msra.mxu1 %v944_v53  ;;  %857 = vmatprep.subr.bf16.mxu0 %v945_v54 }
  0x32   :  { %879 = vmatprep.subr.bf16.mxu1 %v946_v55 }
  0x34   :  { %858 = vmatpush3.bf16.msra.mxu0 %v947_v56 }
  0x35   :  { %880 = vmatpush3.bf16.msra.mxu1 %v948_v57  ;;  %859 = vmatprep.subr.bf16.mxu0 %v949_v58 }
  0x36   :  { %881 = vmatprep.subr.bf16.mxu1 %v950_v59 }
  0x38   :  { %860 = vmatpush3.bf16.msra.mxu0 %v951_v60 }
  0x39   :  { %882 = vmatpush3.bf16.msra.mxu1 %v952_v61  ;;  %861 = vmatprep.subr.bf16.mxu0 %v953_v62 }
  0x3a   :  { %883 = vmatprep.subr.bf16.mxu1 %v954_v63 }
  0x3c   :  { %862 = vmatpush3.bf16.msra.mxu0 %v955_v0 }
  0x3d   :  { %884 = vmatpush3.bf16.msra.mxu1 %v956_v1  ;;  %863 = vmatprep.subr.bf16.mxu0 %v957_v2 }
  0x3e   :  { %885 = vmatprep.subr.bf16.mxu1 %v958_v3 }
  0x40   :  { %864 = vmatpush3.bf16.msra.mxu0 %v959_v4 }
  0x41   :  { %886 = vmatpush3.bf16.msra.mxu1 %v960_v5 }
  0x43   :  { %679 = vmatmul.mubr.bf16.vlgmr.msra.gmra.mxu0 %v737_v7 }
  0x44   :  { %719 = vmatmul.mubr.bf16.vlgmr.msra.gmra.mxu1 %v739_v10 }
  0xe3   :  { %v821_v12 = vpop.f32.mrf.mxu0 }
  0xe4   :  { %v843_v13 = vpop.f32.mrf.mxu1 }
  0xe5   :  { %v822_v14 = vpop.f32.mrf.mxu0 }
  0xe6   :  { %v844_v15 = vpop.f32.mrf.mxu1  ;;  %v823_v20 = vadd.f32 %v822_v14, %v821_v12 }
  0xe7   :  { %v824_v16 = vpop.f32.mrf.mxu0  ;;  %v845_v23 = vadd.f32 %v844_v15, %v843_v13 }
  0xe8   :  { %v846_v17 = vpop.f32.mrf.mxu1  ;;  %v601_v22 = vadd.f32 %v823_v20, %v732_v21 }
  0xe9   :  { %v825_v18 = vpop.f32.mrf.mxu0 }
  0xea   :  { %v847_v19 = vpop.f32.mrf.mxu1  ;;  %v641_v28 = vadd.f32 %v845_v23, %v601_v22 }
 0x103   :  { %v865_v24 = vpop.f32.mrf.mxu0 }
 0x104   :  { %v887_v25 = vpop.f32.mrf.mxu1 }
 0x105   :  { %v866_v26 = vpop.f32.mrf.mxu0 }
 0x106   :  { %v888_v27 = vpop.f32.mrf.mxu1  ;;  %v867_v29 = vadd.f32 %v866_v26, %v865_v24 }
 0x107   :  { %v868_v30 = vpop.f32.mrf.mxu0  ;;  %v889_v33 = vadd.f32 %v888_v27, %v887_v25 }
 0x108   :  { %v890_v31 = vpop.f32.mrf.mxu1  ;;  %v681_v32 = vadd.f32 %v867_v29, %v641_v28 }
 0x109   :  { %v869_v34 = vpop.f32.mrf.mxu0 }
 0x10a   :  { %v891_v35 = vpop.f32.mrf.mxu1  ;;  %v721_v36 = vadd.f32 %v889_v33, %v681_v32 }
 0x10c   :  { %v726_v37 = vpack.c.bf16 %v721_v36, %v721_v36 }
 0x10e   :  { %727 = vst [vmem:[%s1198_s3] sm:$0xf] %v726_v37 }

</bundles_post_ra>
